<compile_context>
chip_gen: v7x
topology: tpu7x:2x2x1
jax: 0.10.0
libtpu: 0.0.40
codegen_flags: <defaults>
</compile_context>

<pallas_src>
import functools

import jax
import jax.numpy as jnp
from jax.experimental import pallas as pl
from jax.experimental.pallas import tpu as pltpu

ACTION_SPACE_DIM = 49    # len(self.action_space) in the PyTorch module
OUT_PAD = 128            # lane-dense padded output width (>= 49, multiple of 128)
ACTION_LANE = 64         # padded output lane that carries the argmax index
H1, H2, H3 = 256, 128, 64
H3_PAD = 128             # layer-3 output padded to a full lane (v5e MXU tiles)
BIAS_ROWS, BIAS_COLS = 4, 256
MIN_SPLIT_ROWS = 1024    # below this, one tile beats splitting (per-step overhead)


def _round_up(v, m):
    return ((v + m - 1) // m) * m


def qnet_kernel(x_ref, w1_ref, w2_ref, w3_ref, w4_ref, b_ref, q_ref):
    x = x_ref[...]                 # (TB, D_in) f32
    b = b_ref[...]                 # (4, 256)  f32, zero padded per row

    def dense(h, w_ref, bias, relu):
        # bf16 x bf16 on the MXU with explicit f32 accumulation.
        y = jnp.dot(h.astype(jnp.bfloat16), w_ref[...],
                    preferred_element_type=jnp.float32)
        y = y + bias
        return jnp.maximum(y, 0.0) if relu else y

    h = dense(x, w1_ref, b[0:1, :H1], relu=True)          # (TB, 256)
    h = dense(h, w2_ref, b[1:2, :H2], relu=True)          # (TB, 128)
    h = dense(h, w3_ref, b[2:3, :H3_PAD], relu=True)      # (TB, 128) (64 real)
    q = dense(h, w4_ref, b[3:4, :OUT_PAD], relu=False)    # (TB, 128) lane-dense

    # Fused select_discrete_action: argmax over the 49 real action lanes,
    # first-index tie-break (matches torch.argmax).  The result (an exact
    # small integer, representable in bf16) is stashed in padded lane 64 so
    # the kernel has a single lane-dense bf16 output store.
    lane = jax.lax.broadcasted_iota(jnp.int32, q.shape, dimension=1)
    valid = lane < ACTION_SPACE_DIM
    q_m = jnp.where(valid, q, -jnp.inf)
    row_max = jnp.max(q_m, axis=1, keepdims=True)
    cand = jnp.where(q_m == row_max, lane.astype(jnp.float32),
                     jnp.float32(OUT_PAD))
    action_f = jnp.min(cand, axis=1, keepdims=True)       # (TB,1) f32, exact int

    q_out = jnp.where(lane == ACTION_LANE, action_f, q)
    q_ref[...] = q_out.astype(q_ref.dtype)


@functools.partial(jax.jit, static_argnames=("block_b",))
def qnetwork_forward(x, params, *, block_b=2048):
    """x: (B, D_in) f32.

    Returns:
      q_slab  : (B_pad, 128) bf16 lane-dense slab.  Columns 0..48 are the Q
                values, columns >= 49 are padding (column 64 carries the
                encoded action index), rows >= B are batch padding.
      actions : (B,) int32 argmax actions (decoded from column 64).
    """
    B, d_in = x.shape

    # --- batch tiling -------------------------------------------------------
    b8 = _round_up(B, 8)
    n_steps = max(1, (b8 + block_b - 1) // block_b)
    # v7x has two TensorCores: keep >= 2 parallel grid steps once the batch is
    # big enough to amortize the extra per-step cost (harmless on v5e/v6e).
    if b8 >= MIN_SPLIT_ROWS:
        n_steps = max(n_steps, 2)
    tb = _round_up((b8 + n_steps - 1) // n_steps, 8)
    b_pad = n_steps * tb
    if b_pad != B:
        x = jnp.pad(x, ((0, b_pad - B), (0, 0)))

    def resident(shape):
        # Same block every grid step -> weights/biases stay in VMEM, no re-DMA.
        return pl.BlockSpec(shape, lambda i: (0, 0))

    vmem_limit = (48 * 1024 * 1024) if tb > 1024 else None

    q_slab = pl.pallas_call(
        qnet_kernel,
        grid=(b_pad // tb,),
        in_specs=[
            pl.BlockSpec((tb, d_in), lambda i: (i, 0)),   # activations (pipelined)
            resident((d_in, H1)),
            resident((H1, H2)),
            resident((H2, H3_PAD)),
            resident((H3_PAD, OUT_PAD)),
            resident((BIAS_ROWS, BIAS_COLS)),
        ],
        out_specs=pl.BlockSpec((tb, OUT_PAD), lambda i: (i, 0)),
        out_shape=jax.ShapeDtypeStruct((b_pad, OUT_PAD), jnp.bfloat16),
        compiler_params=pltpu.CompilerParams(
            dimension_semantics=("parallel",),
            vmem_limit_bytes=vmem_limit),
    )(x, params["w1"], params["w2"], params["w3"], params["w4"],
      params["b_pack"])

    # Tiny decode (2 B/row read): action index was stored exactly in lane 64.
    actions = q_slab[:B, ACTION_LANE].astype(jnp.int32)
    return q_slab, actions


def init_params(key, input_dim):
    """PyTorch-style uniform(-1/sqrt(fan_in), 1/sqrt(fan_in)) init.

    Weights stored (in_features, out_features) in bf16.  Layer-3 output and
    layer-4 input are zero-padded 64 -> 128 (lane-dense intermediate); the
    layer-4 output is zero-padded 49 -> 128.  All biases live in one
    zero-padded (4, 256) f32 buffer (row i = layer i+1 bias, leading lanes).
    """
    real_dims = [(input_dim, H1), (H1, H2), (H2, H3), (H3, ACTION_SPACE_DIM)]
    pad_out = {3: H3_PAD, 4: OUT_PAD}
    pad_in = {4: H3_PAD}
    params = {}
    b_pack = jnp.zeros((BIAS_ROWS, BIAS_COLS), jnp.float32)
    for i, (fan_in, fan_out) in enumerate(real_dims, start=1):
        key, kw, kb = jax.random.split(key, 3)
        bound = 1.0 / (fan_in ** 0.5)
        w = jax.random.uniform(kw, (fan_in, fan_out), jnp.float32,
                               minval=-bound, maxval=bound)
        bvec = jax.random.uniform(kb, (fan_out,), jnp.float32,
                                  minval=-bound, maxval=bound)
        in_p = pad_in.get(i, fan_in)
        out_p = pad_out.get(i, fan_out)
        w = jnp.pad(w, ((0, in_p - fan_in), (0, out_p - fan_out)))
        params[f"w{i}"] = w.astype(jnp.bfloat16)
        b_pack = b_pack.at[i - 1, :fan_out].set(bvec)
    params["b_pack"] = b_pack
    return params


def reference_forward(x, p):
    """Plain-JAX reference with identical bf16-weight / f32-accum arithmetic."""
    def dense(h, w, bias, relu):
        y = jnp.dot(h.astype(jnp.bfloat16), w,
                    preferred_element_type=jnp.float32) + bias
        return jnp.maximum(y, 0.0) if relu else y
    bp = p["b_pack"]
    h = dense(x, p["w1"], bp[0:1, :H1], True)
    h = dense(h, p["w2"], bp[1:2, :H2], True)
    h = dense(h, p["w3"], bp[2:3, :H3_PAD], True)
    q = dense(h, p["w4"], bp[3:4, :OUT_PAD], False)
    return q[:, :ACTION_SPACE_DIM]


if __name__ == "__main__":
    key = jax.random.PRNGKey(0)
    k_x, k_p = jax.random.split(key)

    batch = 256      # batch of observations
    input_dim = 8    # env.observation_space.shape[0] (synthetic)

    x = jax.random.normal(k_x, (batch, input_dim), jnp.float32)
    params = init_params(k_p, input_dim)

    q_slab, actions = qnetwork_forward(x, params)
    q_slab = jax.block_until_ready(q_slab)
    actions = jax.block_until_ready(actions)

    # Decode the Q values from the lane-dense slab for checking only
    # (production consumers keep the padded slab / fuse the narrowing).
    q_vals = q_slab[:batch, :ACTION_SPACE_DIM].astype(jnp.float32)

    # Sanity-check against a plain JAX reference (same bf16/f32 arithmetic;
    # kernel output is additionally rounded to bf16).
    ref_q = reference_forward(x, params)
    assert q_vals.shape == (batch, ACTION_SPACE_DIM)
    assert actions.shape == (batch,)
    assert jnp.allclose(q_vals, ref_q, atol=1e-2, rtol=1e-2)

    # Fused select_discrete_action: chosen action must attain the row max.
    row_max = jnp.max(ref_q, axis=1)
    chosen_q = ref_q[jnp.arange(batch), actions]
    assert jnp.allclose(chosen_q, row_max, atol=2e-3)
    assert jnp.all((actions >= 0) & (actions < ACTION_SPACE_DIM))

    # TODO(synk): action_discrete_to_continuous is a host-side dict lookup
    # (numpy), not a kernel op; apply it outside JAX on the returned indices.

    print("KERNEL_OK")
</pallas_src>

<mosaic_0001>
module attributes {stable_mosaic.version = 11 : i64} {
  func.func @qnet_kernel(%arg0: i32, %arg1: memref<256x8xf32, #tpu.memory_space<vmem>>, %arg2: memref<8x256xbf16, #tpu.memory_space<vmem>>, %arg3: memref<256x128xbf16, #tpu.memory_space<vmem>>, %arg4: memref<128x128xbf16, #tpu.memory_space<vmem>>, %arg5: memref<128x128xbf16, #tpu.memory_space<vmem>>, %arg6: memref<4x256xf32, #tpu.memory_space<vmem>>, %arg7: memref<256x128xbf16, #tpu.memory_space<vmem>>) attributes {dimension_semantics = [#tpu.dimension_semantics<parallel>], iteration_bounds = array<i64: 1>, scalar_prefetch = 0 : i64, scratch_operands = 0 : i64, tpu.core_type = #tpu.core_type<tc>, window_params = [{transform_indices = @transform_0, window_bounds = array<i64: 256, 8>}, {pipeline_mode = #tpu.pipeline_mode<synchronous>, transform_indices = @transform_1, window_bounds = array<i64: 8, 256>}, {pipeline_mode = #tpu.pipeline_mode<synchronous>, transform_indices = @transform_2, window_bounds = array<i64: 256, 128>}, {pipeline_mode = #tpu.pipeline_mode<synchronous>, transform_indices = @transform_3, window_bounds = array<i64: 128, 128>}, {pipeline_mode = #tpu.pipeline_mode<synchronous>, transform_indices = @transform_4, window_bounds = array<i64: 128, 128>}, {pipeline_mode = #tpu.pipeline_mode<synchronous>, transform_indices = @transform_5, window_bounds = array<i64: 4, 256>}, {transform_indices = @transform_6, window_bounds = array<i64: 256, 128>}]} {
    %c0 = arith.constant 0 : index
    %c0_0 = arith.constant 0 : index
    %0 = vector.load %arg1[%c0, %c0_0] : memref<256x8xf32, #tpu.memory_space<vmem>>, vector<256x8xf32>
    %c0_1 = arith.constant 0 : index
    %c0_2 = arith.constant 0 : index
    %1 = vector.load %arg6[%c0_1, %c0_2] : memref<4x256xf32, #tpu.memory_space<vmem>>, vector<4x256xf32>
    %2 = vector.extract_strided_slice %1 {offsets = [0, 0], sizes = [1, 256], strides = [1, 1]} : vector<4x256xf32> to vector<1x256xf32>
    %3 = arith.truncf %0 : vector<256x8xf32> to vector<256x8xbf16>
    %c0_3 = arith.constant 0 : index
    %c0_4 = arith.constant 0 : index
    %4 = vector.load %arg2[%c0_3, %c0_4] : memref<8x256xbf16, #tpu.memory_space<vmem>>, vector<8x256xbf16>
    %cst = arith.constant dense<0.000000e+00> : vector<256x256xf32>
    %5 = tpu.matmul %3, %4, %cst {dimension_numbers = #tpu.dot_dimension_numbers<[1], [0], [0], [1], [0, 0, 1, 1], [], []>} : vector<256x8xbf16>, vector<8x256xbf16>, vector<256x256xf32> -> vector<256x256xf32>
    %6 = vector.broadcast %2 : vector<1x256xf32> to vector<256x256xf32>
    %7 = arith.addf %5, %6 : vector<256x256xf32>
    %cst_5 = arith.constant 0.000000e+00 : f32
    %8 = vector.broadcast %cst_5 : f32 to vector<256x256xf32>
    %9 = arith.maximumf %7, %8 : vector<256x256xf32>
    %10 = vector.extract_strided_slice %1 {offsets = [1, 0], sizes = [1, 128], strides = [1, 1]} : vector<4x256xf32> to vector<1x128xf32>
    %11 = arith.truncf %9 : vector<256x256xf32> to vector<256x256xbf16>
    %c0_6 = arith.constant 0 : index
    %c0_7 = arith.constant 0 : index
    %12 = vector.load %arg3[%c0_6, %c0_7] : memref<256x128xbf16, #tpu.memory_space<vmem>>, vector<256x128xbf16>
    %cst_8 = arith.constant dense<0.000000e+00> : vector<256x128xf32>
    %13 = tpu.matmul %11, %12, %cst_8 {dimension_numbers = #tpu.dot_dimension_numbers<[1], [0], [0], [1], [0, 0, 1, 1], [], []>} : vector<256x256xbf16>, vector<256x128xbf16>, vector<256x128xf32> -> vector<256x128xf32>
    %14 = vector.broadcast %10 : vector<1x128xf32> to vector<256x128xf32>
    %15 = arith.addf %13, %14 : vector<256x128xf32>
    %cst_9 = arith.constant 0.000000e+00 : f32
    %16 = vector.broadcast %cst_9 : f32 to vector<256x128xf32>
    %17 = arith.maximumf %15, %16 : vector<256x128xf32>
    %18 = vector.extract_strided_slice %1 {offsets = [2, 0], sizes = [1, 128], strides = [1, 1]} : vector<4x256xf32> to vector<1x128xf32>
    %19 = arith.truncf %17 : vector<256x128xf32> to vector<256x128xbf16>
    %c0_10 = arith.constant 0 : index
    %c0_11 = arith.constant 0 : index
    %20 = vector.load %arg4[%c0_10, %c0_11] : memref<128x128xbf16, #tpu.memory_space<vmem>>, vector<128x128xbf16>
    %cst_12 = arith.constant dense<0.000000e+00> : vector<256x128xf32>
    %21 = tpu.matmul %19, %20, %cst_12 {dimension_numbers = #tpu.dot_dimension_numbers<[1], [0], [0], [1], [0, 0, 1, 1], [], []>} : vector<256x128xbf16>, vector<128x128xbf16>, vector<256x128xf32> -> vector<256x128xf32>
    %22 = vector.broadcast %18 : vector<1x128xf32> to vector<256x128xf32>
    %23 = arith.addf %21, %22 : vector<256x128xf32>
    %cst_13 = arith.constant 0.000000e+00 : f32
    %24 = vector.broadcast %cst_13 : f32 to vector<256x128xf32>
    %25 = arith.maximumf %23, %24 : vector<256x128xf32>
    %26 = vector.extract_strided_slice %1 {offsets = [3, 0], sizes = [1, 128], strides = [1, 1]} : vector<4x256xf32> to vector<1x128xf32>
    %27 = arith.truncf %25 : vector<256x128xf32> to vector<256x128xbf16>
    %c0_14 = arith.constant 0 : index
    %c0_15 = arith.constant 0 : index
    %28 = vector.load %arg5[%c0_14, %c0_15] : memref<128x128xbf16, #tpu.memory_space<vmem>>, vector<128x128xbf16>
    %cst_16 = arith.constant dense<0.000000e+00> : vector<256x128xf32>
    %29 = tpu.matmul %27, %28, %cst_16 {dimension_numbers = #tpu.dot_dimension_numbers<[1], [0], [0], [1], [0, 0, 1, 1], [], []>} : vector<256x128xbf16>, vector<128x128xbf16>, vector<256x128xf32> -> vector<256x128xf32>
    %30 = vector.broadcast %26 : vector<1x128xf32> to vector<256x128xf32>
    %31 = arith.addf %29, %30 : vector<256x128xf32>
    %32 = tpu.iota {dimensions = array<i32: 1>} : vector<256x128xi32>
    %c49_i32 = arith.constant 49 : i32
    %33 = vector.broadcast %c49_i32 : i32 to vector<256x128xi32>
    %34 = arith.cmpi slt, %32, %33 : vector<256x128xi32>
    %cst_17 = arith.constant 0xFF800000 : f32
    %35 = vector.broadcast %cst_17 : f32 to vector<256x128xf32>
    %36 = arith.select %34, %31, %35 : vector<256x128xi1>, vector<256x128xf32>
    %cst_18 = arith.constant dense<0xFF800000> : vector<256xf32>
    %37 = vector.multi_reduction <maximumf>, %36, %cst_18 [1] : vector<256x128xf32> to vector<256xf32>
    %38 = vector.shape_cast %37 : vector<256xf32> to vector<256x1xf32>
    %39 = vector.broadcast %38 : vector<256x1xf32> to vector<256x128xf32>
    %40 = arith.cmpf oeq, %36, %39 : vector<256x128xf32>
    %41 = arith.sitofp %32 : vector<256x128xi32> to vector<256x128xf32>
    %cst_19 = arith.constant 1.280000e+02 : f32
    %42 = vector.broadcast %cst_19 : f32 to vector<256x128xf32>
    %43 = arith.select %40, %41, %42 : vector<256x128xi1>, vector<256x128xf32>
    %cst_20 = arith.constant dense<0x7F800000> : vector<256xf32>
    %44 = vector.multi_reduction <minimumf>, %43, %cst_20 [1] : vector<256x128xf32> to vector<256xf32>
    %45 = vector.shape_cast %44 : vector<256xf32> to vector<256x1xf32>
    %c64_i32 = arith.constant 64 : i32
    %46 = vector.broadcast %c64_i32 : i32 to vector<256x128xi32>
    %47 = arith.cmpi eq, %32, %46 : vector<256x128xi32>
    %48 = vector.shape_cast %45 : vector<256x1xf32> to vector<256x1xf32>
    %49 = vector.broadcast %48 : vector<256x1xf32> to vector<256x128xf32>
    %50 = arith.select %47, %49, %31 : vector<256x128xi1>, vector<256x128xf32>
    %51 = arith.truncf %50 : vector<256x128xf32> to vector<256x128xbf16>
    %c0_21 = arith.constant 0 : index
    %c0_22 = arith.constant 0 : index
    %52 = vector.load %arg7[%c0_21, %c0_22] : memref<256x128xbf16, #tpu.memory_space<vmem>>, vector<256x128xbf16>
    tpu.vector_store %arg7[%c0_21, %c0_22], %51 {strides = array<i32>} : memref<256x128xbf16, #tpu.memory_space<vmem>>, vector<256x128xbf16>,
    return
  }
  func.func @transform_0(%arg0: i32) -> (i32, i32) {
    %c0_i32 = arith.constant 0 : i32
    %c0_i32_0 = arith.constant 0 : i32
    return %arg0, %c0_i32 : i32, i32
  }
  func.func @transform_1(%arg0: i32) -> (i32, i32) {
    %c0_i32 = arith.constant 0 : i32
    %c0_i32_0 = arith.constant 0 : i32
    %c0_i32_1 = arith.constant 0 : i32
    return %c0_i32, %c0_i32_0 : i32, i32
  }
  func.func @transform_2(%arg0: i32) -> (i32, i32) {
    %c0_i32 = arith.constant 0 : i32
    %c0_i32_0 = arith.constant 0 : i32
    %c0_i32_1 = arith.constant 0 : i32
    return %c0_i32, %c0_i32_0 : i32, i32
  }
  func.func @transform_3(%arg0: i32) -> (i32, i32) {
    %c0_i32 = arith.constant 0 : i32
    %c0_i32_0 = arith.constant 0 : i32
    %c0_i32_1 = arith.constant 0 : i32
    return %c0_i32, %c0_i32_0 : i32, i32
  }
  func.func @transform_4(%arg0: i32) -> (i32, i32) {
    %c0_i32 = arith.constant 0 : i32
    %c0_i32_0 = arith.constant 0 : i32
    %c0_i32_1 = arith.constant 0 : i32
    return %c0_i32, %c0_i32_0 : i32, i32
  }
  func.func @transform_5(%arg0: i32) -> (i32, i32) {
    %c0_i32 = arith.constant 0 : i32
    %c0_i32_0 = arith.constant 0 : i32
    %c0_i32_1 = arith.constant 0 : i32
    return %c0_i32, %c0_i32_0 : i32, i32
  }
  func.func @transform_6(%arg0: i32) -> (i32, i32) {
    %c0_i32 = arith.constant 0 : i32
    %c0_i32_0 = arith.constant 0 : i32
    return %arg0, %c0_i32 : i32, i32
  }
}

</mosaic_0001>

<bundles_post_ra>
// kernel: qnetwork_forward.1
= control target key start
LH: loop header
LB: loop body
LE: loop exit
PB: predicated region body
PF: predicated region fallthrough
CT: control target
= control target key end

     0   :  { %vm147_vm0 = vcmask 1043456   ;;  %v2233_v1 = vmov 0   ;;  %vm98_vm1 = vcmask 64512   ;;  %s3161_s1 = inlined_call_operand.vmem [shape: bf16[8,256], index: 1, kind: input, shape index: {}]   ;;  %s3162_s0 = inlined_call_operand.vmem [shape: f32[256,8], index: 0, kind: input, shape index: {}]   ;;  %s3163_s2 = inlined_call_operand.vmem [shape: bf16[256,128], index: 2, kind: input, shape index: {}]   ;;  %s3164_s5 = inlined_call_operand.vmem [shape: f32[4,256], index: 5, kind: input, shape index: {}]   ;;  %s3165_s3 = inlined_call_operand.vmem [shape: bf16[128,128], index: 3, kind: input, shape index: {}]   ;;  %s3166_s4 = inlined_call_operand.vmem [shape: bf16[128,128], index: 4, kind: input, shape index: {}]   ;;  %s3167_s6 = inlined_call_operand.vmem [shape: bf16[256,128], index: 6, kind: output, shape index: {}]  }
   0x1   :  { %v73_v0 = vld [vmem:[%s3161_s1] sm:$0xff]  ;;  %186 = vmatprep.mubr.bf16.mxu0 %v2233_v1  ;;  %v25_v3 = vld [vmem:[%s3162_s0 + $0x8] sm:$0xff]  ;;  %v26_v8 = vld [vmem:[%s3162_s0 + $0x10] sm:$0xff] }
   0x2   :  { %v24_v2 = vld [vmem:[%s3162_s0] sm:$0xff]  ;;  %v1716_v4 = vcombine.high %v73_v0, %v73_v0  ;;  %v1715_v5 = vcombine.low %v73_v0, %v73_v0  ;;  %v27_v9 = vld [vmem:[%s3162_s0 + $0x18] sm:$0xff]  ;;  %v2202_v13 = vld [vmem:[%s3163_s2 + $0x48] sm:$0xff]  }
   0x3   :  { %v57_v7 = vpack.c.bf16 %v25_v3, %v24_v2  ;;  %v58_v10 = vpack.c.bf16 %v27_v9, %v26_v8  ;;  %v2200_v11 = vld [vmem:[%s3163_s2 + $0x40] sm:$0xff]   ;;  %v2203_v15 = vld [vmem:[%s3163_s2 + $0x8] sm:$0xff]   ;;  %v2204_v16 = vld [vmem:[%s3163_s2 + $0x50] sm:$0xff]  }
   0x4   :  { %1717 = vmatprep.subr.msk.bf16.mxu0 %vm147_vm0, %v1716_v4  ;;  %v149_v6 = vsel %vm147_vm0, %v1715_v5, 0  ;;  %v2201_v12 = vld [vmem:[%s3163_s2] sm:$0xff]   ;;  %1925 = vmatprep.subr.bf16.mxu1 %v2200_v11  ;;  %v29_v17 = vld [vmem:[%s3162_s0 + $0x28] sm:$0xff]  ;;  %v2205_v18 = vld [vmem:[%s3163_s2 + $0x10] sm:$0xff]  }
   0x5   :  { %155 = vmatpush1.bf16.msra.mxu0 %v149_v6  ;;  %v28_v14 = vld [vmem:[%s3162_s0 + $0x20] sm:$0xff]  ;;  %1926 = vmatpush3.bf16.msra.mxu1 %v2201_v12  ;;  %v2206_v20 = vld [vmem:[%s3163_s2 + $0x58] sm:$0xff]   ;;  %v30_v22 = vld [vmem:[%s3162_s0 + $0x30] sm:$0xff]  ;;  %v75_v6 = vlaneseq }
   0x6   :  { %1927 = vmatprep.subr.bf16.mxu1 %v2202_v13  ;;  %v59_v19 = vpack.c.bf16 %v29_v17, %v28_v14  ;;  %v2207_v21 = vld [vmem:[%s3163_s2 + $0x18] sm:$0xff]   ;;  %v2208_v24 = vld [vmem:[%s3163_s2 + $0x60] sm:$0xff]   ;;  %v2210_v27 = vld [vmem:[%s3163_s2 + $0x68] sm:$0xff]  }
   0x7   :  { %v31_v23 = vld [vmem:[%s3162_s0 + $0x38] sm:$0xff]  ;;  %v2209_v25 = vld [vmem:[%s3163_s2 + $0x20] sm:$0xff]   ;;  %v33_v29 = vld [vmem:[%s3162_s0 + $0x48] sm:$0xff] }
   0x8   :  { %1718 = vmatmul.mubr.msk.bf16.vlgmr.msra.gmra.mrb[0].mxu0 %vm98_vm1, %v57_v7  ;;  %v60_v26 = vpack.c.bf16 %v31_v23, %v30_v22  ;;  %v32_v28 = vld [vmem:[%s3162_s0 + $0x40] sm:$0xff]  ;;  %v34_v31 = vld [vmem:[%s3162_s0 + $0x50] sm:$0xff]  ;;  %v35_v32 = vld [vmem:[%s3162_s0 + $0x58] sm:$0xff]  ;;  %v2449_v7 = vshrl.u32 %v75_v6, 7 }
   0x9   :  { %196 = vmatprep.mubr.bf16.mxu0 %v2233_v1  ;;  %1928 = vmatpush3.bf16.msra.mxu1 %v2203_v15  ;;  %v61_v30 = vpack.c.bf16 %v33_v29, %v32_v28  ;;  %v62_v33 = vpack.c.bf16 %v35_v32, %v34_v31  ;;  %v36_v34 = vld [vmem:[%s3162_s0 + $0x60] sm:$0xff]  ;;  %v37_v35 = vld [vmem:[%s3162_s0 + $0x68] sm:$0xff]  ;;  %v38_v37 = vld [vmem:[%s3162_s0 + $0x70] sm:$0xff] }
   0xa   :  { %1929 = vmatprep.subr.bf16.mxu1 %v2204_v16  ;;  %v63_v36 = vpack.c.bf16 %v37_v35, %v36_v34  ;;  %v39_v38 = vld [vmem:[%s3162_s0 + $0x78] sm:$0xff]  ;;  %v40_v40 = vld [vmem:[%s3162_s0 + $0x80] sm:$0xff]  ;;  %v41_v41 = vld [vmem:[%s3162_s0 + $0x88] sm:$0xff]  ;;  %v77_v8 = vsub.s32 0, %v2449_v7  ;;  %v81_v9 = vsub.s32 4, %v2449_v7 }
   0xb   :  { %v64_v39 = vpack.c.bf16 %v39_v38, %v38_v37  ;;  %v65_v42 = vpack.c.bf16 %v41_v41, %v40_v40  ;;  %v42_v43 = vld [vmem:[%s3162_s0 + $0x90] sm:$0xff]  ;;  %v43_v44 = vld [vmem:[%s3162_s0 + $0x98] sm:$0xff]  ;;  %v44_v46 = vld [vmem:[%s3162_s0 + $0xa0] sm:$0xff] }
   0xc   :  { %v66_v45 = vpack.c.bf16 %v43_v44, %v42_v43  ;;  %v45_v47 = vld [vmem:[%s3162_s0 + $0xa8] sm:$0xff]  ;;  %v46_v49 = vld [vmem:[%s3162_s0 + $0xb0] sm:$0xff]  ;;  %v47_v50 = vld [vmem:[%s3162_s0 + $0xb8] sm:$0xff] }
   0xd   :  { %1930 = vmatpush3.bf16.msra.mxu1 %v2205_v18  ;;  %v67_v48 = vpack.c.bf16 %v45_v47, %v44_v46  ;;  %v2211_v51 = vld [vmem:[%s3163_s2 + $0x28] sm:$0xff]   ;;  %v68_v52 = vpack.c.bf16 %v47_v50, %v46_v49  ;;  %v2212_v53 = vld [vmem:[%s3163_s2 + $0x70] sm:$0xff]   ;;  %v2214_v55 = vld [vmem:[%s3163_s2 + $0x78] sm:$0xff]  }
   0xe   :  { %1931 = vmatprep.subr.bf16.mxu1 %v2206_v20  ;;  %v2213_v54 = vld [vmem:[%s3163_s2 + $0x30] sm:$0xff]   ;;  %v48_v56 = vld [vmem:[%s3162_s0 + $0xc0] sm:$0xff]  ;;  %v49_v57 = vld [vmem:[%s3162_s0 + $0xc8] sm:$0xff] }
   0xf   :  { %v2215_v58 = vld [vmem:[%s3163_s2 + $0x38] sm:$0xff]   ;;  %v69_v59 = vpack.c.bf16 %v49_v57, %v48_v56  ;;  %v50_v60 = vld [vmem:[%s3162_s0 + $0xd0] sm:$0xff]  ;;  %v52_v63 = vld [vmem:[%s3162_s0 + $0xe0] sm:$0xff] }
  0x10   :  { %1719 = vmatmul.mubr.msk.bf16.gmra.mrb[4].mxu0 %vm98_vm1, %v58_v10  ;;  %v51_v61 = vld [vmem:[%s3162_s0 + $0xd8] sm:$0xff]  ;;  %v53_v0 = vld [vmem:[%s3162_s0 + $0xe8] sm:$0xff]  ;;  %v54_v3 = vld [vmem:[%s3162_s0 + $0xf0] sm:$0xff] }
  0x11   :  { %206 = vmatprep.mubr.bf16.mxu0 %v2233_v1  ;;  %1932 = vmatpush3.bf16.msra.mxu1 %v2207_v21  ;;  %v70_v62 = vpack.c.bf16 %v51_v61, %v50_v60  ;;  %v71_v2 = vpack.c.bf16 %v53_v0, %v52_v63  ;;  %v55_v4 = vld [vmem:[%s3162_s0 + $0xf8] sm:$0xff]  ;;  %v2216_v23 = vld [vmem:[%s3165_s3] sm:$0xff]   ;;  %v2218_v31 = vld [vmem:[%s3165_s3 + $0x10] sm:$0xff]  }
  0x12   :  { %1933 = vmatprep.subr.bf16.mxu1 %v2208_v24  ;;  %v72_v5 = vpack.c.bf16 %v55_v4, %v54_v3  ;;  %2085 = vmatprep.subr.bf16.mxu0 %v2216_v23 }
  0x13   :  { %2086 = vmatpush3.bf16.msra.mxu0 %v2216_v23 }
  0x15   :  { %1934 = vmatpush3.bf16.msra.mxu1 %v2209_v25  ;;  %v2217_v25 = vld [vmem:[%s3165_s3 + $0x8] sm:$0xff]  }
  0x16   :  { %1935 = vmatprep.subr.bf16.mxu1 %v2210_v27  ;;  %2087 = vmatprep.subr.bf16.mxu0 %v2217_v25 }
  0x17   :  { %2088 = vmatpush3.bf16.msra.mxu0 %v2217_v25 }
  0x18   :  { %1720 = vmatmul.mubr.msk.bf16.gmra.mrb[8].mxu0 %vm98_vm1, %v59_v19  ;;  %2089 = vmatprep.subr.bf16.mxu0 %v2218_v31 }
  0x19   :  { %216 = vmatprep.mubr.bf16.mxu0 %v2233_v1  ;;  %1936 = vmatpush3.bf16.msra.mxu1 %v2211_v51 }
  0x1a   :  { %1937 = vmatprep.subr.bf16.mxu1 %v2212_v53 }
  0x1b   :  { %2090 = vmatpush3.bf16.msra.mxu0 %v2218_v31 }
  0x1d   :  { %1938 = vmatpush3.bf16.msra.mxu1 %v2213_v54 }
  0x1e   :  { %1939 = vmatprep.subr.bf16.mxu1 %v2214_v55 }
  0x20   :  { %1721 = vmatmul.mubr.msk.bf16.gmra.mrb[12].mxu0 %vm98_vm1, %v60_v26 }
  0x21   :  { %226 = vmatprep.mubr.bf16.mxu0 %v2233_v1  ;;  %1940 = vmatpush3.bf16.msra.mxu1 %v2215_v58 }
  0x28   :  { %1722 = vmatmul.mubr.msk.bf16.gmra.mrb[16].mxu0 %vm98_vm1, %v61_v30 }
  0x29   :  { %236 = vmatprep.mubr.bf16.mxu0 %v2233_v1 }
  0x30   :  { %1723 = vmatmul.mubr.msk.bf16.gmra.mrb[20].mxu0 %vm98_vm1, %v62_v33 }
  0x31   :  { %246 = vmatprep.mubr.bf16.mxu0 %v2233_v1 }
  0x38   :  { %1724 = vmatmul.mubr.msk.bf16.gmra.mrb[24].mxu0 %vm98_vm1, %v63_v36 }
  0x39   :  { %256 = vmatprep.mubr.bf16.mxu0 %v2233_v1 }
  0x40   :  { %1725 = vmatmul.mubr.msk.bf16.gmra.mrb[28].mxu0 %vm98_vm1, %v64_v39  ;;  %v2219_v39 = vld [vmem:[%s3165_s3 + $0x18] sm:$0xff]  }
  0x41   :  { %266 = vmatprep.mubr.bf16.mxu0 %v2233_v1  ;;  %2091 = vmatprep.subr.bf16.mxu0 %v2219_v39 }
  0x42   :  { %2092 = vmatpush3.bf16.msra.mxu0 %v2219_v39 }
  0x48   :  { %1726 = vmatmul.mubr.msk.bf16.gmra.mrb[32].mxu0 %vm98_vm1, %v65_v42 }
  0x49   :  { %276 = vmatprep.mubr.bf16.mxu0 %v2233_v1 }
  0x50   :  { %1727 = vmatmul.mubr.msk.bf16.gmra.mrb[36].mxu0 %vm98_vm1, %v66_v45 }
  0x51   :  { %286 = vmatprep.mubr.bf16.mxu0 %v2233_v1 }
  0x58   :  { %1728 = vmatmul.mubr.msk.bf16.gmra.mrb[40].mxu0 %vm98_vm1, %v67_v48 }
  0x59   :  { %296 = vmatprep.mubr.bf16.mxu0 %v2233_v1 }
  0x60   :  { %1729 = vmatmul.mubr.msk.bf16.gmra.mrb[44].mxu0 %vm98_vm1, %v68_v52 }
  0x61   :  { %306 = vmatprep.mubr.bf16.mxu0 %v2233_v1 }
  0x68   :  { %1730 = vmatmul.mubr.msk.bf16.gmra.mrb[48].mxu0 %vm98_vm1, %v69_v59 }
  0x69   :  { %316 = vmatprep.mubr.bf16.mxu0 %v2233_v1 }
  0x70   :  { %1731 = vmatmul.mubr.msk.bf16.gmra.mrb[52].mxu0 %vm98_vm1, %v70_v62 }
  0x71   :  { %326 = vmatprep.mubr.bf16.mxu0 %v2233_v1 }
  0x78   :  { %1732 = vmatmul.mubr.msk.bf16.gmra.mrb[56].mxu0 %vm98_vm1, %v71_v2 }
  0x79   :  { %336 = vmatprep.mubr.bf16.mxu0 %v2233_v1  ;;  %v2455_v1 = vld [vmem:[%s3164_s5] sm:$0xff] }
  0x7a   :  { %v78_v10 = vrot.slane %v2455_v1, %v77_v8  ;;  %v82_v11 = vrot.slane %v2455_v1, %v81_v9 }
  0x7c   :  { %v2460_v12 = vrot.slane %v78_v10, %v77_v8  ;;  %v2462_v13 = vrot.slane %v82_v11, %v77_v8 }
  0x80   :  { %1733 = vmatmul.mubr.msk.bf16.gmra.mrb[60].mxu0 %vm98_vm1, %v72_v5 }
  0xdb   :  { %v188_v14 = vpop.f32.mrb[0].mxu0 }
  0xdc   :  { %v189_v15 = vadd.f32 %v188_v14, %v2460_v12  ;;  %v190_v16 = vpop.f32.mrb[1].mxu0 }
  0xdd   :  { %v191_v17 = vadd.f32 %v190_v16, %v2462_v13  ;;  %v192_v18 = vpop.f32.mrb[2].mxu0 }
  0xde   :  { %v193_v19 = vadd.f32 %v192_v18, %v2460_v12  ;;  %v194_v20 = vpop.f32.mrb[3].mxu0  ;;  %v347_v21 = vmax.f32 %v189_v15, 0.0 }
  0xdf   :  { %v195_v22 = vadd.f32 %v194_v20, %v2462_v13  ;;  %v348_v26 = vmax.f32 %v191_v17, 0.0 }
  0xe0   :  { %v349_v24 = vmax.f32 %v193_v19, 0.0 }
  0xe1   :  { %v350_v27 = vmax.f32 %v195_v22, 0.0 }
  0xe2   :  { %v411_v28 = vpack.c.bf16 %v349_v24, %v347_v21 }
  0xe3   :  { %v198_v29 = vpop.f32.mrb[4].mxu0  ;;  %v412_v30 = vpack.c.bf16 %v350_v27, %v348_v26 }
  0xe4   :  { %v199_v32 = vadd.f32 %v198_v29, %v2460_v12  ;;  %v200_v33 = vpop.f32.mrb[5].mxu0 }
  0xe5   :  { %v201_v34 = vadd.f32 %v200_v33, %v2462_v13  ;;  %v202_v35 = vpop.f32.mrb[6].mxu0  ;;  %607 = vmatprep.mubr.bf16.mxu1 %v412_v30 }
  0xe6   :  { %v203_v36 = vadd.f32 %v202_v35, %v2460_v12  ;;  %v204_v37 = vpop.f32.mrb[7].mxu0  ;;  %608 = vmatmul.mubr.bf16.vlgmr.msra.gmra.mrb[0].mxu1 %v411_v28  ;;  %v351_v40 = vmax.f32 %v199_v32, 0.0 }
  0xe7   :  { %v205_v38 = vadd.f32 %v204_v37, %v2462_v13  ;;  %v352_v42 = vmax.f32 %v201_v34, 0.0 }
  0xe8   :  { %v353_v41 = vmax.f32 %v203_v36, 0.0 }
  0xe9   :  { %v354_v43 = vmax.f32 %v205_v38, 0.0 }
  0xea   :  { %v413_v44 = vpack.c.bf16 %v353_v41, %v351_v40 }
  0xeb   :  { %v414_v45 = vpack.c.bf16 %v354_v43, %v352_v42  ;;  %v208_v46 = vpop.f32.mrb[8].mxu0 }
  0xec   :  { %v209_v47 = vadd.f32 %v208_v46, %v2460_v12  ;;  %v210_v48 = vpop.f32.mrb[9].mxu0 }
  0xed   :  { %v211_v49 = vadd.f32 %v210_v48, %v2462_v13  ;;  %v212_v50 = vpop.f32.mrb[10].mxu0  ;;  %615 = vmatprep.mubr.bf16.mxu1 %v414_v45 }
  0xee   :  { %v213_v51 = vadd.f32 %v212_v50, %v2460_v12  ;;  %v214_v52 = vpop.f32.mrb[11].mxu0  ;;  %616 = vmatmul.mubr.bf16.gmra.mrb[4].mxu1 %v413_v44  ;;  %v355_v54 = vmax.f32 %v209_v47, 0.0 }
  0xef   :  { %v215_v53 = vadd.f32 %v214_v52, %v2462_v13  ;;  %v356_v56 = vmax.f32 %v211_v49, 0.0 }
  0xf0   :  { %v357_v55 = vmax.f32 %v213_v51, 0.0 }
  0xf1   :  { %v358_v57 = vmax.f32 %v215_v53, 0.0 }
  0xf2   :  { %v415_v58 = vpack.c.bf16 %v357_v55, %v355_v54 }
  0xf3   :  { %v416_v59 = vpack.c.bf16 %v358_v57, %v356_v56  ;;  %v218_v60 = vpop.f32.mrb[12].mxu0 }
  0xf4   :  { %v219_v61 = vadd.f32 %v218_v60, %v2460_v12  ;;  %v220_v62 = vpop.f32.mrb[13].mxu0 }
  0xf5   :  { %v221_v63 = vadd.f32 %v220_v62, %v2462_v13  ;;  %v222_v0 = vpop.f32.mrb[14].mxu0  ;;  %623 = vmatprep.mubr.bf16.mxu1 %v416_v59 }
  0xf6   :  { %v223_v2 = vadd.f32 %v222_v0, %v2460_v12  ;;  %v224_v3 = vpop.f32.mrb[15].mxu0  ;;  %624 = vmatmul.mubr.bf16.gmra.mrb[8].mxu1 %v415_v58  ;;  %v359_v5 = vmax.f32 %v219_v61, 0.0 }
  0xf7   :  { %v225_v4 = vadd.f32 %v224_v3, %v2462_v13  ;;  %v360_v9 = vmax.f32 %v221_v63, 0.0 }
  0xf8   :  { %v361_v8 = vmax.f32 %v223_v2, 0.0 }
  0xf9   :  { %v362_v10 = vmax.f32 %v225_v4, 0.0 }
  0xfa   :  { %v417_v11 = vpack.c.bf16 %v361_v8, %v359_v5 }
  0xfb   :  { %v418_v14 = vpack.c.bf16 %v362_v10, %v360_v9  ;;  %v228_v15 = vpop.f32.mrb[16].mxu0 }
  0xfc   :  { %v229_v16 = vadd.f32 %v228_v15, %v2460_v12  ;;  %v230_v17 = vpop.f32.mrb[17].mxu0 }
  0xfd   :  { %v231_v18 = vadd.f32 %v230_v17, %v2462_v13  ;;  %v232_v19 = vpop.f32.mrb[18].mxu0  ;;  %631 = vmatprep.mubr.bf16.mxu1 %v418_v14 }
  0xfe   :  { %v233_v20 = vadd.f32 %v232_v19, %v2460_v12  ;;  %v234_v21 = vpop.f32.mrb[19].mxu0  ;;  %632 = vmatmul.mubr.bf16.gmra.mrb[12].mxu1 %v417_v11  ;;  %v363_v23 = vmax.f32 %v229_v16, 0.0 }
  0xff   :  { %v235_v22 = vadd.f32 %v234_v21, %v2462_v13  ;;  %v364_v25 = vmax.f32 %v231_v18, 0.0 }
 0x100   :  { %v365_v24 = vmax.f32 %v233_v20, 0.0 }
 0x101   :  { %v366_v26 = vmax.f32 %v235_v22, 0.0 }
 0x102   :  { %v419_v27 = vpack.c.bf16 %v365_v24, %v363_v23 }
 0x103   :  { %v420_v28 = vpack.c.bf16 %v366_v26, %v364_v25  ;;  %v238_v29 = vpop.f32.mrb[20].mxu0 }
 0x104   :  { %v239_v30 = vadd.f32 %v238_v29, %v2460_v12  ;;  %v240_v31 = vpop.f32.mrb[21].mxu0 }
 0x105   :  { %v241_v32 = vadd.f32 %v240_v31, %v2462_v13  ;;  %v242_v33 = vpop.f32.mrb[22].mxu0  ;;  %639 = vmatprep.mubr.bf16.mxu1 %v420_v28 }
 0x106   :  { %v243_v34 = vadd.f32 %v242_v33, %v2460_v12  ;;  %v244_v35 = vpop.f32.mrb[23].mxu0  ;;  %640 = vmatmul.mubr.bf16.gmra.mrb[16].mxu1 %v419_v27  ;;  %v367_v37 = vmax.f32 %v239_v30, 0.0 }
 0x107   :  { %v245_v36 = vadd.f32 %v244_v35, %v2462_v13  ;;  %v368_v39 = vmax.f32 %v241_v32, 0.0 }
 0x108   :  { %v369_v38 = vmax.f32 %v243_v34, 0.0 }
 0x109   :  { %v370_v40 = vmax.f32 %v245_v36, 0.0 }
 0x10a   :  { %v421_v41 = vpack.c.bf16 %v369_v38, %v367_v37 }
 0x10b   :  { %v422_v42 = vpack.c.bf16 %v370_v40, %v368_v39  ;;  %v248_v43 = vpop.f32.mrb[24].mxu0 }
 0x10c   :  { %v249_v44 = vadd.f32 %v248_v43, %v2460_v12  ;;  %v250_v45 = vpop.f32.mrb[25].mxu0 }
 0x10d   :  { %v251_v46 = vadd.f32 %v250_v45, %v2462_v13  ;;  %v252_v47 = vpop.f32.mrb[26].mxu0  ;;  %647 = vmatprep.mubr.bf16.mxu1 %v422_v42 }
 0x10e   :  { %v253_v48 = vadd.f32 %v252_v47, %v2460_v12  ;;  %v254_v49 = vpop.f32.mrb[27].mxu0  ;;  %648 = vmatmul.mubr.bf16.gmra.mrb[20].mxu1 %v421_v41  ;;  %v371_v51 = vmax.f32 %v249_v44, 0.0 }
 0x10f   :  { %v255_v50 = vadd.f32 %v254_v49, %v2462_v13  ;;  %v372_v53 = vmax.f32 %v251_v46, 0.0 }
 0x110   :  { %v373_v52 = vmax.f32 %v253_v48, 0.0 }
 0x111   :  { %v374_v54 = vmax.f32 %v255_v50, 0.0 }
 0x112   :  { %v423_v55 = vpack.c.bf16 %v373_v52, %v371_v51 }
 0x113   :  { %v424_v56 = vpack.c.bf16 %v374_v54, %v372_v53  ;;  %v258_v57 = vpop.f32.mrb[28].mxu0 }
 0x114   :  { %v259_v58 = vadd.f32 %v258_v57, %v2460_v12  ;;  %v260_v59 = vpop.f32.mrb[29].mxu0 }
 0x115   :  { %v261_v60 = vadd.f32 %v260_v59, %v2462_v13  ;;  %v262_v61 = vpop.f32.mrb[30].mxu0  ;;  %655 = vmatprep.mubr.bf16.mxu1 %v424_v56 }
 0x116   :  { %v263_v62 = vadd.f32 %v262_v61, %v2460_v12  ;;  %v264_v63 = vpop.f32.mrb[31].mxu0  ;;  %656 = vmatmul.mubr.bf16.gmra.mrb[24].mxu1 %v423_v55  ;;  %v375_v2 = vmax.f32 %v259_v58, 0.0 }
 0x117   :  { %v265_v0 = vadd.f32 %v264_v63, %v2462_v13  ;;  %v376_v4 = vmax.f32 %v261_v60, 0.0 }
 0x118   :  { %v377_v3 = vmax.f32 %v263_v62, 0.0 }
 0x119   :  { %v378_v5 = vmax.f32 %v265_v0, 0.0 }
 0x11a   :  { %v425_v8 = vpack.c.bf16 %v377_v3, %v375_v2 }
 0x11b   :  { %v426_v9 = vpack.c.bf16 %v378_v5, %v376_v4  ;;  %v268_v10 = vpop.f32.mrb[32].mxu0 }
 0x11c   :  { %v269_v11 = vadd.f32 %v268_v10, %v2460_v12  ;;  %v270_v14 = vpop.f32.mrb[33].mxu0 }
 0x11d   :  { %v271_v15 = vadd.f32 %v270_v14, %v2462_v13  ;;  %v272_v16 = vpop.f32.mrb[34].mxu0  ;;  %663 = vmatprep.mubr.bf16.mxu1 %v426_v9 }
 0x11e   :  { %v273_v17 = vadd.f32 %v272_v16, %v2460_v12  ;;  %v274_v18 = vpop.f32.mrb[35].mxu0  ;;  %664 = vmatmul.mubr.bf16.gmra.mrb[28].mxu1 %v425_v8  ;;  %v379_v20 = vmax.f32 %v269_v11, 0.0  ;;  %v2220_v8 = vld [vmem:[%s3165_s3 + $0x20] sm:$0xff]  }
 0x11f   :  { %v275_v19 = vadd.f32 %v274_v18, %v2462_v13  ;;  %v380_v22 = vmax.f32 %v271_v15, 0.0  ;;  %2093 = vmatprep.subr.bf16.mxu0 %v2220_v8  ;;  %v2221_v18 = vld [vmem:[%s3165_s3 + $0x28] sm:$0xff]  }
 0x120   :  { %v381_v21 = vmax.f32 %v273_v17, 0.0  ;;  %2094 = vmatpush3.bf16.msra.mxu0 %v2220_v8  ;;  %v477_v8 = vsub.s32 1, %v2449_v7 }
 0x121   :  { %v382_v23 = vmax.f32 %v275_v19, 0.0  ;;  %2095 = vmatprep.subr.bf16.mxu0 %v2221_v18 }
 0x122   :  { %v427_v24 = vpack.c.bf16 %v381_v21, %v379_v20 }
 0x123   :  { %v428_v25 = vpack.c.bf16 %v382_v23, %v380_v22  ;;  %v278_v26 = vpop.f32.mrb[36].mxu0 }
 0x124   :  { %v279_v27 = vadd.f32 %v278_v26, %v2460_v12  ;;  %v280_v28 = vpop.f32.mrb[37].mxu0  ;;  %2096 = vmatpush3.bf16.msra.mxu0 %v2221_v18  ;;  %v2222_v26 = vld [vmem:[%s3165_s3 + $0x30] sm:$0xff]  }
 0x125   :  { %v281_v29 = vadd.f32 %v280_v28, %v2462_v13  ;;  %v282_v30 = vpop.f32.mrb[38].mxu0  ;;  %671 = vmatprep.mubr.bf16.mxu1 %v428_v25  ;;  %2097 = vmatprep.subr.bf16.mxu0 %v2222_v26 }
 0x126   :  { %v283_v31 = vadd.f32 %v282_v30, %v2460_v12  ;;  %v284_v32 = vpop.f32.mrb[39].mxu0  ;;  %672 = vmatmul.mubr.bf16.gmra.mrb[32].mxu1 %v427_v24  ;;  %v383_v34 = vmax.f32 %v279_v27, 0.0 }
 0x127   :  { %v285_v33 = vadd.f32 %v284_v32, %v2462_v13  ;;  %v384_v36 = vmax.f32 %v281_v29, 0.0 }
 0x128   :  { %v385_v35 = vmax.f32 %v283_v31, 0.0  ;;  %2098 = vmatpush3.bf16.msra.mxu0 %v2222_v26 }
 0x129   :  { %v386_v37 = vmax.f32 %v285_v33, 0.0 }
 0x12a   :  { %v429_v38 = vpack.c.bf16 %v385_v35, %v383_v34  ;;  %v2223_v34 = vld [vmem:[%s3165_s3 + $0x38] sm:$0xff]  }
 0x12b   :  { %v430_v39 = vpack.c.bf16 %v386_v37, %v384_v36  ;;  %v288_v40 = vpop.f32.mrb[40].mxu0  ;;  %2099 = vmatprep.subr.bf16.mxu0 %v2223_v34 }
 0x12c   :  { %v289_v41 = vadd.f32 %v288_v40, %v2460_v12  ;;  %v290_v42 = vpop.f32.mrb[41].mxu0  ;;  %2100 = vmatpush3.bf16.msra.mxu0 %v2223_v34 }
 0x12d   :  { %v291_v43 = vadd.f32 %v290_v42, %v2462_v13  ;;  %v292_v44 = vpop.f32.mrb[42].mxu0  ;;  %679 = vmatprep.mubr.bf16.mxu1 %v430_v39 }
 0x12e   :  { %v293_v45 = vadd.f32 %v292_v44, %v2460_v12  ;;  %v294_v46 = vpop.f32.mrb[43].mxu0  ;;  %680 = vmatmul.mubr.bf16.gmra.mrb[36].mxu1 %v429_v38  ;;  %v387_v48 = vmax.f32 %v289_v41, 0.0 }
 0x12f   :  { %v295_v47 = vadd.f32 %v294_v46, %v2462_v13  ;;  %v388_v50 = vmax.f32 %v291_v43, 0.0 }
 0x130   :  { %v389_v49 = vmax.f32 %v293_v45, 0.0 }
 0x131   :  { %v390_v51 = vmax.f32 %v295_v47, 0.0 }
 0x132   :  { %v431_v52 = vpack.c.bf16 %v389_v49, %v387_v48 }
 0x133   :  { %v432_v53 = vpack.c.bf16 %v390_v51, %v388_v50  ;;  %v298_v54 = vpop.f32.mrb[44].mxu0 }
 0x134   :  { %v299_v55 = vadd.f32 %v298_v54, %v2460_v12  ;;  %v300_v56 = vpop.f32.mrb[45].mxu0 }
 0x135   :  { %v301_v57 = vadd.f32 %v300_v56, %v2462_v13  ;;  %v302_v58 = vpop.f32.mrb[46].mxu0  ;;  %687 = vmatprep.mubr.bf16.mxu1 %v432_v53 }
 0x136   :  { %v303_v59 = vadd.f32 %v302_v58, %v2460_v12  ;;  %v304_v60 = vpop.f32.mrb[47].mxu0  ;;  %688 = vmatmul.mubr.bf16.gmra.mrb[40].mxu1 %v431_v52  ;;  %v391_v62 = vmax.f32 %v299_v55, 0.0 }
 0x137   :  { %v305_v61 = vadd.f32 %v304_v60, %v2462_v13  ;;  %v392_v0 = vmax.f32 %v301_v57, 0.0 }
 0x138   :  { %v393_v63 = vmax.f32 %v303_v59, 0.0 }
 0x139   :  { %v394_v2 = vmax.f32 %v305_v61, 0.0 }
 0x13a   :  { %v433_v3 = vpack.c.bf16 %v393_v63, %v391_v62 }
 0x13b   :  { %v434_v4 = vpack.c.bf16 %v394_v2, %v392_v0  ;;  %v308_v5 = vpop.f32.mrb[48].mxu0 }
 0x13c   :  { %v309_v9 = vadd.f32 %v308_v5, %v2460_v12  ;;  %v310_v10 = vpop.f32.mrb[49].mxu0 }
 0x13d   :  { %v311_v11 = vadd.f32 %v310_v10, %v2462_v13  ;;  %v312_v14 = vpop.f32.mrb[50].mxu0  ;;  %695 = vmatprep.mubr.bf16.mxu1 %v434_v4  ;;  %v2554_v10 = vrot.slane %v2455_v1, %v477_v8  ;;  %v2225_v1 = vld [vmem:[%s3166_s4 + $0x8] sm:$0xff]  }
 0x13e   :  { %v313_v15 = vadd.f32 %v312_v14, %v2460_v12  ;;  %v314_v16 = vpop.f32.mrb[51].mxu0  ;;  %696 = vmatmul.mubr.bf16.gmra.mrb[44].mxu1 %v433_v3  ;;  %v395_v19 = vmax.f32 %v309_v9, 0.0 }
 0x13f   :  { %v315_v17 = vadd.f32 %v314_v16, %v2462_v13  ;;  %v396_v21 = vmax.f32 %v311_v11, 0.0 }
 0x140   :  { %v397_v20 = vmax.f32 %v313_v15, 0.0 }
 0x141   :  { %v398_v22 = vmax.f32 %v315_v17, 0.0  ;;  %v2224_v17 = vld [vmem:[%s3166_s4] sm:$0xff]  }
 0x142   :  { %v435_v23 = vpack.c.bf16 %v397_v20, %v395_v19  ;;  %2181 = vmatprep.subr.bf16.mxu1 %v2224_v17  ;;  %2133 = vmatprep.subr.bf16.mxu0 %v2224_v17 }
 0x143   :  { %v436_v24 = vpack.c.bf16 %v398_v22, %v396_v21  ;;  %v318_v25 = vpop.f32.mrb[52].mxu0  ;;  %2189 = vmatpush3.bf16.msra.mxu1 %v2224_v17 }
 0x144   :  { %v319_v27 = vadd.f32 %v318_v25, %v2460_v12  ;;  %v320_v28 = vpop.f32.mrb[53].mxu0  ;;  %2182 = vmatprep.subr.bf16.mxu1 %v2225_v1 }
 0x145   :  { %v321_v29 = vadd.f32 %v320_v28, %v2462_v13  ;;  %v322_v30 = vpop.f32.mrb[54].mxu0  ;;  %703 = vmatprep.mubr.bf16.mxu1 %v436_v24 }
 0x146   :  { %v323_v31 = vadd.f32 %v322_v30, %v2460_v12  ;;  %v324_v32 = vpop.f32.mrb[55].mxu0  ;;  %704 = vmatmul.mubr.bf16.gmra.mrb[48].mxu1 %v435_v23  ;;  %v399_v35 = vmax.f32 %v319_v27, 0.0  ;;  %v2226_v27 = vld [vmem:[%s3166_s4 + $0x10] sm:$0xff]  }
 0x147   :  { %v325_v33 = vadd.f32 %v324_v32, %v2462_v13  ;;  %v400_v37 = vmax.f32 %v321_v29, 0.0  ;;  %2190 = vmatpush3.bf16.msra.mxu1 %v2225_v1 }
 0x148   :  { %v401_v36 = vmax.f32 %v323_v31, 0.0  ;;  %2183 = vmatprep.subr.bf16.mxu1 %v2226_v27  ;;  %v2227_v31 = vld [vmem:[%s3166_s4 + $0x18] sm:$0xff]  }
 0x149   :  { %v402_v38 = vmax.f32 %v325_v33, 0.0 }
 0x14a   :  { %v437_v39 = vpack.c.bf16 %v401_v36, %v399_v35 }
 0x14b   :  { %v438_v40 = vpack.c.bf16 %v402_v38, %v400_v37  ;;  %v328_v41 = vpop.f32.mrb[56].mxu0  ;;  %2191 = vmatpush3.bf16.msra.mxu1 %v2226_v27 }
 0x14c   :  { %v329_v42 = vadd.f32 %v328_v41, %v2460_v12  ;;  %v330_v43 = vpop.f32.mrb[57].mxu0  ;;  %2184 = vmatprep.subr.bf16.mxu1 %v2227_v31 }
 0x14d   :  { %v331_v44 = vadd.f32 %v330_v43, %v2462_v13  ;;  %v332_v45 = vpop.f32.mrb[58].mxu0  ;;  %711 = vmatprep.mubr.bf16.mxu1 %v438_v40  ;;  %v2228_v40 = vld [vmem:[%s3166_s4 + $0x20] sm:$0xff]  }
 0x14e   :  { %v333_v46 = vadd.f32 %v332_v45, %v2460_v12  ;;  %v334_v47 = vpop.f32.mrb[59].mxu0  ;;  %712 = vmatmul.mubr.bf16.gmra.mrb[52].mxu1 %v437_v39  ;;  %v403_v49 = vmax.f32 %v329_v42, 0.0 }
 0x14f   :  { %v335_v48 = vadd.f32 %v334_v47, %v2462_v13  ;;  %v404_v51 = vmax.f32 %v331_v44, 0.0  ;;  %2192 = vmatpush3.bf16.msra.mxu1 %v2227_v31  ;;  %v2229_v44 = vld [vmem:[%s3166_s4 + $0x28] sm:$0xff]  }
 0x150   :  { %v405_v50 = vmax.f32 %v333_v46, 0.0  ;;  %2185 = vmatprep.subr.bf16.mxu1 %v2228_v40 }
 0x151   :  { %v406_v52 = vmax.f32 %v335_v48, 0.0 }
 0x152   :  { %v439_v53 = vpack.c.bf16 %v405_v50, %v403_v49 }
 0x153   :  { %v440_v54 = vpack.c.bf16 %v406_v52, %v404_v51  ;;  %v338_v55 = vpop.f32.mrb[60].mxu0  ;;  %2193 = vmatpush3.bf16.msra.mxu1 %v2228_v40 }
 0x154   :  { %v339_v56 = vadd.f32 %v338_v55, %v2460_v12  ;;  %v340_v57 = vpop.f32.mrb[61].mxu0  ;;  %2186 = vmatprep.subr.bf16.mxu1 %v2229_v44 }
 0x155   :  { %v341_v58 = vadd.f32 %v340_v57, %v2462_v13  ;;  %v342_v59 = vpop.f32.mrb[62].mxu0  ;;  %719 = vmatprep.mubr.bf16.mxu1 %v440_v54 }
 0x156   :  { %v343_v60 = vadd.f32 %v342_v59, %v2460_v12  ;;  %v344_v61 = vpop.f32.mrb[63].mxu0  ;;  %720 = vmatmul.mubr.bf16.gmra.mrb[56].mxu1 %v439_v53  ;;  %v407_v63 = vmax.f32 %v339_v56, 0.0 }
 0x157   :  { %v345_v62 = vadd.f32 %v344_v61, %v2462_v13  ;;  %v408_v2 = vmax.f32 %v341_v58, 0.0  ;;  %2194 = vmatpush3.bf16.msra.mxu1 %v2229_v44 }
 0x158   :  { %v409_v0 = vmax.f32 %v343_v60, 0.0 }
 0x159   :  { %v410_v3 = vmax.f32 %v345_v62, 0.0 }
 0x15a   :  { %v441_v4 = vpack.c.bf16 %v409_v0, %v407_v63 }
 0x15b   :  { %v442_v5 = vpack.c.bf16 %v410_v3, %v408_v2 }
 0x15d   :  { %727 = vmatprep.mubr.bf16.mxu1 %v442_v5 }
 0x15e   :  { %728 = vmatmul.mubr.bf16.gmra.mrb[60].mxu1 %v441_v4 }
 0x1b9   :  { %v1941_v9 = vpop.f32.mrb[0].mxu1 }
 0x1ba   :  { %v1942_v11 = vpop.f32.mrb[1].mxu1 }
 0x1bb   :  { %v1943_v12 = vadd.f32 %v1942_v11, %v1941_v9  ;;  %v1944_v14 = vpop.f32.mrb[2].mxu1 }
 0x1bc   :  { %v1945_v15 = vpop.f32.mrb[3].mxu1 }
 0x1bd   :  { %v610_v13 = vadd.f32 %v1943_v12, %v2554_v10  ;;  %v1946_v16 = vadd.f32 %v1945_v15, %v1944_v14 }
 0x1bf   :  { %v613_v18 = vadd.f32 %v1946_v16, %v2554_v10  ;;  %v736_v19 = vmax.f32 %v610_v13, 0.0 }
 0x1c1   :  { %v737_v20 = vmax.f32 %v613_v18, 0.0  ;;  %v1947_v21 = vpop.f32.mrb[4].mxu1 }
 0x1c2   :  { %v1948_v22 = vpop.f32.mrb[5].mxu1 }
 0x1c3   :  { %v1949_v23 = vadd.f32 %v1948_v22, %v1947_v21  ;;  %v1950_v24 = vpop.f32.mrb[6].mxu1  ;;  %v768_v25 = vpack.c.bf16 %v737_v20, %v736_v19 }
 0x1c4   :  { %v1951_v26 = vpop.f32.mrb[7].mxu1 }
 0x1c5   :  { %v618_v28 = vadd.f32 %v1949_v23, %v2554_v10  ;;  %v1952_v29 = vadd.f32 %v1951_v26, %v1950_v24  ;;  %2101 = vmatprep.mubr.bf16.mxu0 %v768_v25 }
 0x1c7   :  { %v621_v30 = vadd.f32 %v1952_v29, %v2554_v10  ;;  %v738_v32 = vmax.f32 %v618_v28, 0.0 }
 0x1c9   :  { %v739_v33 = vmax.f32 %v621_v30, 0.0  ;;  %v1953_v34 = vpop.f32.mrb[8].mxu1 }
 0x1ca   :  { %v1954_v35 = vpop.f32.mrb[9].mxu1 }
 0x1cb   :  { %v769_v36 = vpack.c.bf16 %v739_v33, %v738_v32  ;;  %v1955_v37 = vadd.f32 %v1954_v35, %v1953_v34  ;;  %v1956_v38 = vpop.f32.mrb[10].mxu1 }
 0x1cc   :  { %v1957_v39 = vpop.f32.mrb[11].mxu1 }
 0x1cd   :  { %v626_v41 = vadd.f32 %v1955_v37, %v2554_v10  ;;  %v1958_v42 = vadd.f32 %v1957_v39, %v1956_v38  ;;  %2102 = vmatmul.mubr.bf16.vlgmr.msra.gmra.mrb[64].mxu0 %v769_v36 }
 0x1ce   :  { %2134 = vmatpush3.bf16.msra.mxu0 %v2224_v17 }
 0x1cf   :  { %v629_v43 = vadd.f32 %v1958_v42, %v2554_v10  ;;  %2135 = vmatprep.subr.bf16.mxu0 %v2225_v1  ;;  %v740_v45 = vmax.f32 %v626_v41, 0.0 }
 0x1d1   :  { %v741_v46 = vmax.f32 %v629_v43, 0.0  ;;  %v1959_v47 = vpop.f32.mrb[12].mxu1 }
 0x1d2   :  { %v1960_v48 = vpop.f32.mrb[13].mxu1  ;;  %2136 = vmatpush3.bf16.msra.mxu0 %v2225_v1 }
 0x1d3   :  { %v1961_v49 = vadd.f32 %v1960_v48, %v1959_v47  ;;  %v1962_v50 = vpop.f32.mrb[14].mxu1  ;;  %v770_v51 = vpack.c.bf16 %v741_v46, %v740_v45  ;;  %2137 = vmatprep.subr.bf16.mxu0 %v2226_v27 }
 0x1d4   :  { %v1963_v52 = vpop.f32.mrb[15].mxu1 }
 0x1d5   :  { %v634_v53 = vadd.f32 %v1961_v49, %v2554_v10  ;;  %v1964_v54 = vadd.f32 %v1963_v52, %v1962_v50  ;;  %2105 = vmatprep.mubr.bf16.mxu0 %v770_v51 }
 0x1d6   :  { %2138 = vmatpush3.bf16.msra.mxu0 %v2226_v27 }
 0x1d7   :  { %v637_v55 = vadd.f32 %v1964_v54, %v2554_v10  ;;  %2139 = vmatprep.subr.bf16.mxu0 %v2227_v31  ;;  %v742_v56 = vmax.f32 %v634_v53, 0.0 }
 0x1d9   :  { %v743_v57 = vmax.f32 %v637_v55, 0.0  ;;  %v1965_v58 = vpop.f32.mrb[16].mxu1 }
 0x1da   :  { %v1966_v59 = vpop.f32.mrb[17].mxu1  ;;  %2140 = vmatpush3.bf16.msra.mxu0 %v2227_v31 }
 0x1db   :  { %v1967_v60 = vadd.f32 %v1966_v59, %v1965_v58  ;;  %v1968_v61 = vpop.f32.mrb[18].mxu1  ;;  %v771_v62 = vpack.c.bf16 %v743_v57, %v742_v56  ;;  %2141 = vmatprep.subr.bf16.mxu0 %v2228_v40 }
 0x1dc   :  { %v1969_v63 = vpop.f32.mrb[19].mxu1 }
 0x1dd   :  { %v642_v0 = vadd.f32 %v1967_v60, %v2554_v10  ;;  %v1970_v2 = vadd.f32 %v1969_v63, %v1968_v61  ;;  %2106 = vmatmul.mubr.bf16.gmra.mrb[68].mxu0 %v771_v62 }
 0x1de   :  { %2142 = vmatpush3.bf16.msra.mxu0 %v2228_v40 }
 0x1df   :  { %v645_v3 = vadd.f32 %v1970_v2, %v2554_v10  ;;  %2143 = vmatprep.subr.bf16.mxu0 %v2229_v44  ;;  %v744_v4 = vmax.f32 %v642_v0, 0.0 }
 0x1e1   :  { %v745_v5 = vmax.f32 %v645_v3, 0.0  ;;  %v1971_v8 = vpop.f32.mrb[20].mxu1 }
 0x1e2   :  { %v1972_v9 = vpop.f32.mrb[21].mxu1  ;;  %2144 = vmatpush3.bf16.msra.mxu0 %v2229_v44 }
 0x1e3   :  { %v1973_v11 = vadd.f32 %v1972_v9, %v1971_v8  ;;  %v1974_v12 = vpop.f32.mrb[22].mxu1  ;;  %v772_v14 = vpack.c.bf16 %v745_v5, %v744_v4 }
 0x1e4   :  { %v1975_v15 = vpop.f32.mrb[23].mxu1 }
 0x1e5   :  { %v650_v13 = vadd.f32 %v1973_v11, %v2554_v10  ;;  %v1976_v16 = vadd.f32 %v1975_v15, %v1974_v12  ;;  %2109 = vmatprep.mubr.bf16.mxu0 %v772_v14 }
 0x1e7   :  { %v653_v17 = vadd.f32 %v1976_v16, %v2554_v10  ;;  %v746_v18 = vmax.f32 %v650_v13, 0.0 }
 0x1e9   :  { %v747_v19 = vmax.f32 %v653_v17, 0.0  ;;  %v1977_v1 = vpop.f32.mrb[24].mxu1 }
 0x1ea   :  { %v1978_v20 = vpop.f32.mrb[25].mxu1 }
 0x1eb   :  { %v1979_v21 = vadd.f32 %v1978_v20, %v1977_v1  ;;  %v1980_v22 = vpop.f32.mrb[26].mxu1  ;;  %v773_v23 = vpack.c.bf16 %v747_v19, %v746_v18 }
 0x1ec   :  { %v1981_v24 = vpop.f32.mrb[27].mxu1 }
 0x1ed   :  { %v658_v25 = vadd.f32 %v1979_v21, %v2554_v10  ;;  %v1982_v26 = vadd.f32 %v1981_v24, %v1980_v22  ;;  %2110 = vmatmul.mubr.bf16.gmra.mrb[72].mxu0 %v773_v23 }
 0x1ef   :  { %v661_v27 = vadd.f32 %v1982_v26, %v2554_v10  ;;  %v748_v28 = vmax.f32 %v658_v25, 0.0 }
 0x1f1   :  { %v749_v29 = vmax.f32 %v661_v27, 0.0  ;;  %v1983_v30 = vpop.f32.mrb[28].mxu1 }
 0x1f2   :  { %v1984_v31 = vpop.f32.mrb[29].mxu1 }
 0x1f3   :  { %v1985_v32 = vadd.f32 %v1984_v31, %v1983_v30  ;;  %v1986_v33 = vpop.f32.mrb[30].mxu1  ;;  %v774_v34 = vpack.c.bf16 %v749_v29, %v748_v28 }
 0x1f4   :  { %v1987_v35 = vpop.f32.mrb[31].mxu1 }
 0x1f5   :  { %v666_v36 = vadd.f32 %v1985_v32, %v2554_v10  ;;  %v1988_v37 = vadd.f32 %v1987_v35, %v1986_v33  ;;  %2113 = vmatprep.mubr.bf16.mxu0 %v774_v34 }
 0x1f7   :  { %v669_v38 = vadd.f32 %v1988_v37, %v2554_v10  ;;  %v750_v39 = vmax.f32 %v666_v36, 0.0  ;;  %v2230_v36 = vld [vmem:[%s3166_s4 + $0x30] sm:$0xff]  }
 0x1f8   :  { %2145 = vmatprep.subr.bf16.mxu0 %v2230_v36  ;;  %2187 = vmatprep.subr.bf16.mxu1 %v2230_v36 }
 0x1f9   :  { %v751_v40 = vmax.f32 %v669_v38, 0.0  ;;  %v1989_v41 = vpop.f32.mrb[32].mxu1  ;;  %2146 = vmatpush3.bf16.msra.mxu0 %v2230_v36  ;;  %2195 = vmatpush3.bf16.msra.mxu1 %v2230_v36 }
 0x1fa   :  { %v1990_v42 = vpop.f32.mrb[33].mxu1 }
 0x1fb   :  { %v1991_v43 = vadd.f32 %v1990_v42, %v1989_v41  ;;  %v1992_v44 = vpop.f32.mrb[34].mxu1  ;;  %v775_v45 = vpack.c.bf16 %v751_v40, %v750_v39 }
 0x1fc   :  { %v1993_v46 = vpop.f32.mrb[35].mxu1 }
 0x1fd   :  { %v674_v47 = vadd.f32 %v1991_v43, %v2554_v10  ;;  %v1994_v48 = vadd.f32 %v1993_v46, %v1992_v44  ;;  %2114 = vmatmul.mubr.bf16.gmra.mrb[76].mxu0 %v775_v45  ;;  %v2231_v44 = vld [vmem:[%s3166_s4 + $0x38] sm:$0xff]  }
 0x1fe   :  { %2147 = vmatprep.subr.bf16.mxu0 %v2231_v44  ;;  %2188 = vmatprep.subr.bf16.mxu1 %v2231_v44 }
 0x1ff   :  { %v677_v49 = vadd.f32 %v1994_v48, %v2554_v10  ;;  %v752_v50 = vmax.f32 %v674_v47, 0.0  ;;  %2148 = vmatpush3.bf16.msra.mxu0 %v2231_v44  ;;  %2196 = vmatpush3.bf16.msra.mxu1 %v2231_v44 }
 0x201   :  { %v753_v51 = vmax.f32 %v677_v49, 0.0  ;;  %v1995_v52 = vpop.f32.mrb[36].mxu1 }
 0x202   :  { %v1996_v53 = vpop.f32.mrb[37].mxu1 }
 0x203   :  { %v1997_v54 = vadd.f32 %v1996_v53, %v1995_v52  ;;  %v1998_v55 = vpop.f32.mrb[38].mxu1  ;;  %v776_v56 = vpack.c.bf16 %v753_v51, %v752_v50 }
 0x204   :  { %v1999_v57 = vpop.f32.mrb[39].mxu1 }
 0x205   :  { %v682_v58 = vadd.f32 %v1997_v54, %v2554_v10  ;;  %v2000_v59 = vadd.f32 %v1999_v57, %v1998_v55  ;;  %2117 = vmatprep.mubr.bf16.mxu0 %v776_v56 }
 0x207   :  { %v685_v60 = vadd.f32 %v2000_v59, %v2554_v10  ;;  %v754_v61 = vmax.f32 %v682_v58, 0.0 }
 0x209   :  { %v755_v62 = vmax.f32 %v685_v60, 0.0  ;;  %v2001_v63 = vpop.f32.mrb[40].mxu1 }
 0x20a   :  { %v2002_v0 = vpop.f32.mrb[41].mxu1 }
 0x20b   :  { %v2003_v2 = vadd.f32 %v2002_v0, %v2001_v63  ;;  %v2004_v3 = vpop.f32.mrb[42].mxu1  ;;  %v777_v4 = vpack.c.bf16 %v755_v62, %v754_v61 }
 0x20c   :  { %v2005_v5 = vpop.f32.mrb[43].mxu1 }
 0x20d   :  { %v690_v8 = vadd.f32 %v2003_v2, %v2554_v10  ;;  %v2006_v9 = vadd.f32 %v2005_v5, %v2004_v3  ;;  %2118 = vmatmul.mubr.bf16.gmra.mrb[80].mxu0 %v777_v4 }
 0x20f   :  { %v693_v11 = vadd.f32 %v2006_v9, %v2554_v10  ;;  %v756_v12 = vmax.f32 %v690_v8, 0.0 }
 0x211   :  { %v757_v14 = vmax.f32 %v693_v11, 0.0  ;;  %v2007_v15 = vpop.f32.mrb[44].mxu1  ;;  %v802_v11 = vsub.s32 2, %v2449_v7 }
 0x212   :  { %v2008_v13 = vpop.f32.mrb[45].mxu1 }
 0x213   :  { %v2009_v16 = vadd.f32 %v2008_v13, %v2007_v15  ;;  %v2010_v17 = vpop.f32.mrb[46].mxu1  ;;  %v778_v18 = vpack.c.bf16 %v757_v14, %v756_v12  ;;  %v2616_v12 = vld [vmem:[%s3164_s5] sm:$0xff] }
 0x214   :  { %v2011_v19 = vpop.f32.mrb[47].mxu1  ;;  %v2619_v14 = vrot.slane %v2616_v12, %v802_v11 }
 0x215   :  { %v698_v1 = vadd.f32 %v2009_v16, %v2554_v10  ;;  %v2012_v20 = vadd.f32 %v2011_v19, %v2010_v17  ;;  %2121 = vmatprep.mubr.bf16.mxu0 %v778_v18 }
 0x217   :  { %v701_v21 = vadd.f32 %v2012_v20, %v2554_v10  ;;  %v758_v22 = vmax.f32 %v698_v1, 0.0 }
 0x219   :  { %v759_v23 = vmax.f32 %v701_v21, 0.0  ;;  %v2013_v24 = vpop.f32.mrb[48].mxu1 }
 0x21a   :  { %v2014_v25 = vpop.f32.mrb[49].mxu1 }
 0x21b   :  { %v2015_v26 = vadd.f32 %v2014_v25, %v2013_v24  ;;  %v2016_v27 = vpop.f32.mrb[50].mxu1  ;;  %v779_v28 = vpack.c.bf16 %v759_v23, %v758_v22 }
 0x21c   :  { %v2017_v29 = vpop.f32.mrb[51].mxu1 }
 0x21d   :  { %v706_v30 = vadd.f32 %v2015_v26, %v2554_v10  ;;  %v2018_v31 = vadd.f32 %v2017_v29, %v2016_v27  ;;  %2122 = vmatmul.mubr.bf16.gmra.mrb[84].mxu0 %v779_v28 }
 0x21f   :  { %v709_v32 = vadd.f32 %v2018_v31, %v2554_v10  ;;  %v760_v33 = vmax.f32 %v706_v30, 0.0 }
 0x221   :  { %v761_v34 = vmax.f32 %v709_v32, 0.0  ;;  %v2019_v35 = vpop.f32.mrb[52].mxu1 }
 0x222   :  { %v2020_v37 = vpop.f32.mrb[53].mxu1 }
 0x223   :  { %v2021_v38 = vadd.f32 %v2020_v37, %v2019_v35  ;;  %v2022_v39 = vpop.f32.mrb[54].mxu1  ;;  %v780_v40 = vpack.c.bf16 %v761_v34, %v760_v33 }
 0x224   :  { %v2023_v41 = vpop.f32.mrb[55].mxu1 }
 0x225   :  { %v714_v42 = vadd.f32 %v2021_v38, %v2554_v10  ;;  %v2024_v43 = vadd.f32 %v2023_v41, %v2022_v39  ;;  %2125 = vmatprep.mubr.bf16.mxu0 %v780_v40 }
 0x227   :  { %v717_v45 = vadd.f32 %v2024_v43, %v2554_v10  ;;  %v762_v46 = vmax.f32 %v714_v42, 0.0 }
 0x229   :  { %v763_v47 = vmax.f32 %v717_v45, 0.0  ;;  %v2025_v48 = vpop.f32.mrb[56].mxu1 }
 0x22a   :  { %v2026_v49 = vpop.f32.mrb[57].mxu1 }
 0x22b   :  { %v2027_v50 = vadd.f32 %v2026_v49, %v2025_v48  ;;  %v2028_v51 = vpop.f32.mrb[58].mxu1  ;;  %v781_v52 = vpack.c.bf16 %v763_v47, %v762_v46 }
 0x22c   :  { %v2029_v53 = vpop.f32.mrb[59].mxu1 }
 0x22d   :  { %v722_v54 = vadd.f32 %v2027_v50, %v2554_v10  ;;  %v2030_v55 = vadd.f32 %v2029_v53, %v2028_v51  ;;  %2126 = vmatmul.mubr.bf16.gmra.mrb[88].mxu0 %v781_v52 }
 0x22f   :  { %v725_v56 = vadd.f32 %v2030_v55, %v2554_v10  ;;  %v764_v57 = vmax.f32 %v722_v54, 0.0 }
 0x231   :  { %v765_v58 = vmax.f32 %v725_v56, 0.0  ;;  %v2031_v59 = vpop.f32.mrb[60].mxu1 }
 0x232   :  { %v2032_v60 = vpop.f32.mrb[61].mxu1 }
 0x233   :  { %v2033_v61 = vadd.f32 %v2032_v60, %v2031_v59  ;;  %v2034_v62 = vpop.f32.mrb[62].mxu1  ;;  %v782_v63 = vpack.c.bf16 %v765_v58, %v764_v57 }
 0x234   :  { %v2035_v0 = vpop.f32.mrb[63].mxu1 }
 0x235   :  { %v730_v2 = vadd.f32 %v2033_v61, %v2554_v10  ;;  %v2036_v3 = vadd.f32 %v2035_v0, %v2034_v62  ;;  %2129 = vmatprep.mubr.bf16.mxu0 %v782_v63 }
 0x237   :  { %v733_v4 = vadd.f32 %v2036_v3, %v2554_v10  ;;  %v766_v5 = vmax.f32 %v730_v2, 0.0 }
 0x239   :  { %v767_v8 = vmax.f32 %v733_v4, 0.0 }
 0x23b   :  { %v783_v9 = vpack.c.bf16 %v767_v8, %v766_v5 }
 0x23d   :  { %2130 = vmatmul.mubr.bf16.gmra.mrb[92].mxu0 %v783_v9 }
 0x2a0   :  { %v2103_v15 = vpop.f32.mrb[64].mxu0 }
 0x2a1   :  { %v895_v13 = vadd.f32 %v2103_v15, %v2619_v14  ;;  %v886_v16 = vpop.f32.mrb[65].mxu0 }
 0x2a2   :  { %v887_v10 = vadd.f32 %v886_v16, %v2619_v14  ;;  %v2104_v17 = vpop.f32.mrb[66].mxu0 }
 0x2a3   :  { %v898_v18 = vadd.f32 %v2104_v17, %v2619_v14  ;;  %v889_v19 = vpop.f32.mrb[67].mxu0  ;;  %v1015_v20 = vmax.f32 %v895_v13, 0.0 }
 0x2a4   :  { %v890_v1 = vadd.f32 %v889_v19, %v2619_v14  ;;  %v1013_v22 = vmax.f32 %v887_v10, 0.0 }
 0x2a5   :  { %v1016_v21 = vmax.f32 %v898_v18, 0.0 }
 0x2a6   :  { %v1014_v23 = vmax.f32 %v890_v1, 0.0 }
 0x2a7   :  { %v1046_v24 = vpack.c.bf16 %v1016_v21, %v1015_v20 }
 0x2a8   :  { %v1045_v25 = vpack.c.bf16 %v1014_v23, %v1013_v22 }
 0x2aa   :  { %2149 = vmatprep.mubr.bf16.mxu0 %v1045_v25 }
 0x2ab   :  { %2150 = vmatmul.mubr.bf16.vlgmr.msra.gmra.mrb[96].mxu0 %v1046_v24 }
 0x2b0   :  { %v2107_v26 = vpop.f32.mrb[68].mxu0 }
 0x2b1   :  { %v911_v27 = vadd.f32 %v2107_v26, %v2619_v14  ;;  %v902_v28 = vpop.f32.mrb[69].mxu0 }
 0x2b2   :  { %v903_v29 = vadd.f32 %v902_v28, %v2619_v14  ;;  %v2108_v30 = vpop.f32.mrb[70].mxu0 }
 0x2b3   :  { %v914_v31 = vadd.f32 %v2108_v30, %v2619_v14  ;;  %v905_v32 = vpop.f32.mrb[71].mxu0  ;;  %v1019_v34 = vmax.f32 %v911_v27, 0.0 }
 0x2b4   :  { %v906_v33 = vadd.f32 %v905_v32, %v2619_v14  ;;  %v1017_v36 = vmax.f32 %v903_v29, 0.0 }
 0x2b5   :  { %v1020_v35 = vmax.f32 %v914_v31, 0.0 }
 0x2b6   :  { %v1018_v37 = vmax.f32 %v906_v33, 0.0 }
 0x2b7   :  { %v1048_v38 = vpack.c.bf16 %v1020_v35, %v1019_v34 }
 0x2b8   :  { %v1047_v39 = vpack.c.bf16 %v1018_v37, %v1017_v36 }
 0x2ba   :  { %2153 = vmatprep.mubr.bf16.mxu1 %v1047_v39 }
 0x2bb   :  { %2154 = vmatmul.mubr.bf16.vlgmr.msra.gmra.mrb[64].mxu1 %v1048_v38 }
 0x2c0   :  { %v2111_v40 = vpop.f32.mrb[72].mxu0 }
 0x2c1   :  { %v927_v41 = vadd.f32 %v2111_v40, %v2619_v14  ;;  %v918_v42 = vpop.f32.mrb[73].mxu0 }
 0x2c2   :  { %v919_v43 = vadd.f32 %v918_v42, %v2619_v14  ;;  %v2112_v44 = vpop.f32.mrb[74].mxu0 }
 0x2c3   :  { %v930_v45 = vadd.f32 %v2112_v44, %v2619_v14  ;;  %v921_v46 = vpop.f32.mrb[75].mxu0  ;;  %v1023_v48 = vmax.f32 %v927_v41, 0.0 }
 0x2c4   :  { %v922_v47 = vadd.f32 %v921_v46, %v2619_v14  ;;  %v1021_v50 = vmax.f32 %v919_v43, 0.0 }
 0x2c5   :  { %v1024_v49 = vmax.f32 %v930_v45, 0.0 }
 0x2c6   :  { %v1022_v51 = vmax.f32 %v922_v47, 0.0 }
 0x2c7   :  { %v1050_v52 = vpack.c.bf16 %v1024_v49, %v1023_v48 }
 0x2c8   :  { %v1049_v53 = vpack.c.bf16 %v1022_v51, %v1021_v50 }
 0x2ca   :  { %2157 = vmatprep.mubr.bf16.mxu1 %v1049_v53 }
 0x2cb   :  { %2158 = vmatmul.mubr.bf16.gmra.mrb[68].mxu1 %v1050_v52 }
 0x2d0   :  { %v2115_v54 = vpop.f32.mrb[76].mxu0 }
 0x2d1   :  { %v943_v55 = vadd.f32 %v2115_v54, %v2619_v14  ;;  %v934_v56 = vpop.f32.mrb[77].mxu0 }
 0x2d2   :  { %v935_v57 = vadd.f32 %v934_v56, %v2619_v14  ;;  %v2116_v58 = vpop.f32.mrb[78].mxu0 }
 0x2d3   :  { %v946_v59 = vadd.f32 %v2116_v58, %v2619_v14  ;;  %v937_v60 = vpop.f32.mrb[79].mxu0  ;;  %v1027_v62 = vmax.f32 %v943_v55, 0.0 }
 0x2d4   :  { %v938_v61 = vadd.f32 %v937_v60, %v2619_v14  ;;  %v1025_v0 = vmax.f32 %v935_v57, 0.0 }
 0x2d5   :  { %v1028_v63 = vmax.f32 %v946_v59, 0.0 }
 0x2d6   :  { %v1026_v2 = vmax.f32 %v938_v61, 0.0 }
 0x2d7   :  { %v1052_v3 = vpack.c.bf16 %v1028_v63, %v1027_v62 }
 0x2d8   :  { %v1051_v4 = vpack.c.bf16 %v1026_v2, %v1025_v0  ;;  %v1079_v0 = vsub.s32 3, %v2449_v7  ;;  %v2655_v2 = vand.u32 127, %v75_v6 }
 0x2da   :  { %2161 = vmatprep.mubr.bf16.mxu1 %v1051_v4  ;;  %vm1292_vm2 = vcmp.lt.s32.totalorder %v2655_v2, 49 }
 0x2db   :  { %2162 = vmatmul.mubr.bf16.gmra.mrb[72].mxu1 %v1052_v3  ;;  %v2658_v3 = vrot.slane %v2616_v12, %v1079_v0 }
 0x2e0   :  { %v2119_v5 = vpop.f32.mrb[80].mxu0 }
 0x2e1   :  { %v959_v8 = vadd.f32 %v2119_v5, %v2619_v14  ;;  %v950_v9 = vpop.f32.mrb[81].mxu0 }
 0x2e2   :  { %v951_v11 = vadd.f32 %v950_v9, %v2619_v14  ;;  %v2120_v15 = vpop.f32.mrb[82].mxu0 }
 0x2e3   :  { %v962_v13 = vadd.f32 %v2120_v15, %v2619_v14  ;;  %v953_v16 = vpop.f32.mrb[83].mxu0  ;;  %v1031_v17 = vmax.f32 %v959_v8, 0.0 }
 0x2e4   :  { %v954_v10 = vadd.f32 %v953_v16, %v2619_v14  ;;  %v1029_v19 = vmax.f32 %v951_v11, 0.0 }
 0x2e5   :  { %v1032_v18 = vmax.f32 %v962_v13, 0.0 }
 0x2e6   :  { %v1030_v1 = vmax.f32 %v954_v10, 0.0 }
 0x2e7   :  { %v1054_v20 = vpack.c.bf16 %v1032_v18, %v1031_v17 }
 0x2e8   :  { %v1053_v21 = vpack.c.bf16 %v1030_v1, %v1029_v19 }
 0x2ea   :  { %2165 = vmatprep.mubr.bf16.mxu1 %v1053_v21 }
 0x2eb   :  { %2166 = vmatmul.mubr.bf16.gmra.mrb[76].mxu1 %v1054_v20 }
 0x2f0   :  { %v2123_v22 = vpop.f32.mrb[84].mxu0 }
 0x2f1   :  { %v975_v23 = vadd.f32 %v2123_v22, %v2619_v14  ;;  %v966_v24 = vpop.f32.mrb[85].mxu0 }
 0x2f2   :  { %v967_v25 = vadd.f32 %v966_v24, %v2619_v14  ;;  %v2124_v26 = vpop.f32.mrb[86].mxu0 }
 0x2f3   :  { %v978_v27 = vadd.f32 %v2124_v26, %v2619_v14  ;;  %v969_v28 = vpop.f32.mrb[87].mxu0  ;;  %v1035_v30 = vmax.f32 %v975_v23, 0.0 }
 0x2f4   :  { %v970_v29 = vadd.f32 %v969_v28, %v2619_v14  ;;  %v1033_v32 = vmax.f32 %v967_v25, 0.0 }
 0x2f5   :  { %v1036_v31 = vmax.f32 %v978_v27, 0.0 }
 0x2f6   :  { %v1034_v33 = vmax.f32 %v970_v29, 0.0 }
 0x2f7   :  { %v1056_v34 = vpack.c.bf16 %v1036_v31, %v1035_v30 }
 0x2f8   :  { %v1055_v35 = vpack.c.bf16 %v1034_v33, %v1033_v32 }
 0x2fa   :  { %2169 = vmatprep.mubr.bf16.mxu1 %v1055_v35 }
 0x2fb   :  { %2170 = vmatmul.mubr.bf16.gmra.mrb[80].mxu1 %v1056_v34 }
 0x300   :  { %v2127_v36 = vpop.f32.mrb[88].mxu0 }
 0x301   :  { %v991_v37 = vadd.f32 %v2127_v36, %v2619_v14  ;;  %v982_v38 = vpop.f32.mrb[89].mxu0 }
 0x302   :  { %v983_v39 = vadd.f32 %v982_v38, %v2619_v14  ;;  %v2128_v40 = vpop.f32.mrb[90].mxu0 }
 0x303   :  { %v994_v41 = vadd.f32 %v2128_v40, %v2619_v14  ;;  %v985_v42 = vpop.f32.mrb[91].mxu0  ;;  %v1039_v44 = vmax.f32 %v991_v37, 0.0 }
 0x304   :  { %v986_v43 = vadd.f32 %v985_v42, %v2619_v14  ;;  %v1037_v46 = vmax.f32 %v983_v39, 0.0 }
 0x305   :  { %v1040_v45 = vmax.f32 %v994_v41, 0.0 }
 0x306   :  { %v1038_v47 = vmax.f32 %v986_v43, 0.0 }
 0x307   :  { %v1058_v48 = vpack.c.bf16 %v1040_v45, %v1039_v44 }
 0x308   :  { %v1057_v49 = vpack.c.bf16 %v1038_v47, %v1037_v46 }
 0x30a   :  { %2173 = vmatprep.mubr.bf16.mxu1 %v1057_v49 }
 0x30b   :  { %2174 = vmatmul.mubr.bf16.gmra.mrb[84].mxu1 %v1058_v48 }
 0x310   :  { %v2131_v50 = vpop.f32.mrb[92].mxu0 }
 0x311   :  { %v1007_v51 = vadd.f32 %v2131_v50, %v2619_v14  ;;  %v998_v52 = vpop.f32.mrb[93].mxu0 }
 0x312   :  { %v999_v53 = vadd.f32 %v998_v52, %v2619_v14  ;;  %v2132_v54 = vpop.f32.mrb[94].mxu0 }
 0x313   :  { %v1010_v55 = vadd.f32 %v2132_v54, %v2619_v14  ;;  %v1001_v56 = vpop.f32.mrb[95].mxu0  ;;  %v1043_v58 = vmax.f32 %v1007_v51, 0.0 }
 0x314   :  { %v1002_v57 = vadd.f32 %v1001_v56, %v2619_v14  ;;  %v1041_v60 = vmax.f32 %v999_v53, 0.0 }
 0x315   :  { %v1044_v59 = vmax.f32 %v1010_v55, 0.0 }
 0x316   :  { %v1042_v61 = vmax.f32 %v1002_v57, 0.0 }
 0x317   :  { %v1060_v62 = vpack.c.bf16 %v1044_v59, %v1043_v58 }
 0x318   :  { %v1059_v63 = vpack.c.bf16 %v1042_v61, %v1041_v60 }
 0x31a   :  { %2177 = vmatprep.mubr.bf16.mxu1 %v1059_v63 }
 0x31b   :  { %2178 = vmatmul.mubr.bf16.gmra.mrb[88].mxu1 %v1060_v62 }
 0x37e   :  { %v2151_v4 = vpop.f32.mrb[96].mxu0 }
 0x37f   :  { %v2662_v14 = vadd.f32 %v2151_v4, %v2658_v3  ;;  %v1163_v5 = vpop.f32.mrb[97].mxu0 }
 0x380   :  { %v2665_v8 = vadd.f32 %v1163_v5, %v2658_v3  ;;  %v2152_v9 = vpop.f32.mrb[98].mxu0 }
 0x381   :  { %v2668_v11 = vadd.f32 %v2152_v9, %v2658_v3  ;;  %v1166_v7 = vpop.f32.mrb[99].mxu0  ;;  %v2673_v6 = vsel %vm1292_vm2, %v2662_v14, -inf }
 0x382   :  { %v2676_v12 = vadd.f32 %v1166_v7, %v2658_v3  ;;  %1329 = vmax.xlane.f32.xlu1 %v2673_v6  ;;  %v2682_v15 = vsel %vm1292_vm2, %v2665_v8, -inf }
 0x383   :  { %1325 = vmax.xlane.f32.xlu0 %v2682_v15  ;;  %v2688_v13 = vsel %vm1292_vm2, %v2668_v11, -inf }
 0x384   :  { %v2694_v16 = vsel %vm1292_vm2, %v2676_v12, -inf }
 0x386   :  { %1331 = vmax.xlane.f32.xlu1 %v2688_v13 }
 0x387   :  { %1327 = vmax.xlane.f32.xlu0 %v2694_v16 }
 0x38e   :  { %v2155_v10 = vpop.f32.mrb[64].mxu1 }
 0x38f   :  { %v2698_v17 = vadd.f32 %v2155_v10, %v2658_v3  ;;  %v1179_v18 = vpop.f32.mrb[65].mxu1 }
 0x390   :  { %v2156_v19 = vpop.f32.mrb[66].mxu1  ;;  %v2701_v1 = vadd.f32 %v1179_v18, %v2658_v3 }
 0x391   :  { %v2704_v20 = vadd.f32 %v2156_v19, %v2658_v3  ;;  %v1182_v21 = vpop.f32.mrb[67].mxu1  ;;  %v2709_v22 = vsel %vm1292_vm2, %v2698_v17, -inf }
 0x392   :  { %1337 = vmax.xlane.f32.xlu0 %v2709_v22  ;;  %v2713_v23 = vadd.f32 %v1182_v21, %v2658_v3  ;;  %v2724_v25 = vsel %vm1292_vm2, %v2701_v1, -inf }
 0x393   :  { %v2718_v24 = vsel %vm1292_vm2, %v2704_v20, -inf }
 0x394   :  { %1339 = vmax.xlane.f32.xlu1 %v2718_v24  ;;  %v2730_v26 = vsel %vm1292_vm2, %v2713_v23, -inf }
 0x396   :  { %1333 = vmax.xlane.f32.xlu0 %v2724_v25 }
 0x398   :  { %1335 = vmax.xlane.f32.xlu1 %v2730_v26 }
 0x39e   :  { %v2159_v27 = vpop.f32.mrb[68].mxu1 }
 0x39f   :  { %v2734_v28 = vadd.f32 %v2159_v27, %v2658_v3  ;;  %v1195_v29 = vpop.f32.mrb[69].mxu1 }
 0x3a0   :  { %v2160_v30 = vpop.f32.mrb[70].mxu1  ;;  %v2737_v31 = vadd.f32 %v1195_v29, %v2658_v3 }
 0x3a1   :  { %v2740_v32 = vadd.f32 %v2160_v30, %v2658_v3  ;;  %v1198_v33 = vpop.f32.mrb[71].mxu1  ;;  %v2745_v34 = vsel %vm1292_vm2, %v2734_v28, -inf }
 0x3a2   :  { %1345 = vmax.xlane.f32.xlu0 %v2745_v34  ;;  %v2749_v35 = vadd.f32 %v1198_v33, %v2658_v3  ;;  %v2760_v37 = vsel %vm1292_vm2, %v2737_v31, -inf }
 0x3a3   :  { %v2754_v36 = vsel %vm1292_vm2, %v2740_v32, -inf }
 0x3a4   :  { %1347 = vmax.xlane.f32.xlu1 %v2754_v36  ;;  %v2766_v38 = vsel %vm1292_vm2, %v2749_v35, -inf }
 0x3a6   :  { %1341 = vmax.xlane.f32.xlu0 %v2760_v37 }
 0x3a8   :  { %1343 = vmax.xlane.f32.xlu1 %v2766_v38 }
 0x3ae   :  { %v2163_v39 = vpop.f32.mrb[72].mxu1 }
 0x3af   :  { %v2770_v40 = vadd.f32 %v2163_v39, %v2658_v3  ;;  %v1211_v41 = vpop.f32.mrb[73].mxu1 }
 0x3b0   :  { %v2164_v42 = vpop.f32.mrb[74].mxu1  ;;  %v2773_v43 = vadd.f32 %v1211_v41, %v2658_v3 }
 0x3b1   :  { %v2776_v44 = vadd.f32 %v2164_v42, %v2658_v3  ;;  %v1214_v45 = vpop.f32.mrb[75].mxu1  ;;  %v2781_v46 = vsel %vm1292_vm2, %v2770_v40, -inf }
 0x3b2   :  { %1353 = vmax.xlane.f32.xlu0 %v2781_v46  ;;  %v2785_v47 = vadd.f32 %v1214_v45, %v2658_v3  ;;  %v2796_v49 = vsel %vm1292_vm2, %v2773_v43, -inf }
 0x3b3   :  { %v2790_v48 = vsel %vm1292_vm2, %v2776_v44, -inf }
 0x3b4   :  { %1355 = vmax.xlane.f32.xlu1 %v2790_v48  ;;  %v2802_v50 = vsel %vm1292_vm2, %v2785_v47, -inf }
 0x3b6   :  { %1349 = vmax.xlane.f32.xlu0 %v2796_v49 }
 0x3b8   :  { %1351 = vmax.xlane.f32.xlu1 %v2802_v50 }
 0x3be   :  { %v2167_v51 = vpop.f32.mrb[76].mxu1 }
 0x3bf   :  { %v2806_v52 = vadd.f32 %v2167_v51, %v2658_v3  ;;  %v1227_v53 = vpop.f32.mrb[77].mxu1 }
 0x3c0   :  { %v2168_v54 = vpop.f32.mrb[78].mxu1  ;;  %v2809_v55 = vadd.f32 %v1227_v53, %v2658_v3 }
 0x3c1   :  { %v2812_v56 = vadd.f32 %v2168_v54, %v2658_v3  ;;  %v1230_v57 = vpop.f32.mrb[79].mxu1  ;;  %v2817_v58 = vsel %vm1292_vm2, %v2806_v52, -inf }
 0x3c2   :  { %1361 = vmax.xlane.f32.xlu0 %v2817_v58  ;;  %v2821_v59 = vadd.f32 %v1230_v57, %v2658_v3  ;;  %v2832_v61 = vsel %vm1292_vm2, %v2809_v55, -inf }
 0x3c3   :  { %v2826_v60 = vsel %vm1292_vm2, %v2812_v56, -inf }
 0x3c4   :  { %1363 = vmax.xlane.f32.xlu1 %v2826_v60  ;;  %v2838_v62 = vsel %vm1292_vm2, %v2821_v59, -inf }
 0x3c6   :  { %1357 = vmax.xlane.f32.xlu0 %v2832_v61 }
 0x3c8   :  { %1359 = vmax.xlane.f32.xlu1 %v2838_v62 }
 0x3ce   :  { %v2171_v63 = vpop.f32.mrb[80].mxu1 }
 0x3cf   :  { %v2842_v0 = vadd.f32 %v2171_v63, %v2658_v3  ;;  %v1243_v4 = vpop.f32.mrb[81].mxu1 }
 0x3d0   :  { %v2172_v5 = vpop.f32.mrb[82].mxu1  ;;  %v2845_v9 = vadd.f32 %v1243_v4, %v2658_v3 }
 0x3d1   :  { %v2848_v7 = vadd.f32 %v2172_v5, %v2658_v3  ;;  %v1246_v10 = vpop.f32.mrb[83].mxu1  ;;  %v2853_v18 = vsel %vm1292_vm2, %v2842_v0, -inf }
 0x3d2   :  { %1369 = vmax.xlane.f32.xlu0 %v2853_v18  ;;  %v2857_v19 = vadd.f32 %v1246_v10, %v2658_v3  ;;  %v2868_v27 = vsel %vm1292_vm2, %v2845_v9, -inf }
 0x3d3   :  { %v2862_v21 = vsel %vm1292_vm2, %v2848_v7, -inf }
 0x3d4   :  { %3177 = vst [vmem:[#allocation2_spill] sm:$0xff] %v2857_v19  ;;  %1371 = vmax.xlane.f32.xlu1 %v2862_v21  ;;  %v2874_v29 = vsel %vm1292_vm2, %v2857_v19, -inf }
 0x3d6   :  { %1365 = vmax.xlane.f32.xlu0 %v2868_v27 }
 0x3d8   :  { %1367 = vmax.xlane.f32.xlu1 %v2874_v29 }
 0x3de   :  { %v2175_v30 = vpop.f32.mrb[84].mxu1 }
 0x3df   :  { %v2878_v33 = vadd.f32 %v2175_v30, %v2658_v3  ;;  %v1259_v39 = vpop.f32.mrb[85].mxu1 }
 0x3e0   :  { %v2176_v41 = vpop.f32.mrb[86].mxu1  ;;  %v2881_v42 = vadd.f32 %v1259_v39, %v2658_v3 }
 0x3e1   :  { %3178 = vst [vmem:[#allocation3_spill] sm:$0xff] %v2878_v33  ;;  %v2884_v45 = vadd.f32 %v2176_v41, %v2658_v3  ;;  %v1262_v51 = vpop.f32.mrb[87].mxu1  ;;  %v2889_v53 = vsel %vm1292_vm2, %v2878_v33, -inf }
 0x3e2   :  { %3179 = vst [vmem:[#allocation4_spill] sm:$0xff] %v2881_v42  ;;  %1377 = vmax.xlane.f32.xlu0 %v2889_v53  ;;  %v2893_v54 = vadd.f32 %v1262_v51, %v2658_v3  ;;  %v2904_v63 = vsel %vm1292_vm2, %v2881_v42, -inf }
 0x3e3   :  { %3180 = vst [vmem:[#allocation5_spill] sm:$0xff] %v2884_v45  ;;  %v2898_v57 = vsel %vm1292_vm2, %v2884_v45, -inf }
 0x3e4   :  { %3181 = vst [vmem:[#allocation6_spill] sm:$0xff] %v2893_v54  ;;  %1379 = vmax.xlane.f32.xlu1 %v2898_v57  ;;  %v2910_v4 = vsel %vm1292_vm2, %v2893_v54, -inf }
 0x3e6   :  { %1373 = vmax.xlane.f32.xlu0 %v2904_v63 }
 0x3e8   :  { %1375 = vmax.xlane.f32.xlu1 %v2910_v4 }
 0x3ee   :  { %v2179_v5 = vpop.f32.mrb[88].mxu1 }
 0x3ef   :  { %v1275_v10 = vpop.f32.mrb[89].mxu1  ;;  %v2917_v51 = vadd.f32 %v2179_v5, %v2658_v3 }
 0x3f0   :  { %v2914_v30 = vadd.f32 %v1275_v10, %v2658_v3  ;;  %v2180_v39 = vpop.f32.mrb[90].mxu1 }
 0x3f1   :  { %v1278_v41 = vpop.f32.mrb[91].mxu1  ;;  %3183 = vst [vmem:[#allocation8_spill] sm:$0xff] %v2917_v51  ;;  %v2929_v45 = vadd.f32 %v2180_v39, %v2658_v3  ;;  %v2940_v5 = vsel %vm1292_vm2, %v2917_v51, -inf }
 0x3f2   :  { %3182 = vst [vmem:[#allocation7_spill] sm:$0xff] %v2914_v30  ;;  %v2920_v42 = vadd.f32 %v1278_v41, %v2658_v3  ;;  %v2925_v54 = vsel %vm1292_vm2, %v2914_v30, -inf  ;;  %v2950_v3 = vcvt.s32.f32 %v2655_v2 }
 0x3f3   :  { %1381 = vmax.xlane.f32.xlu0 %v2925_v54  ;;  %3185 = vst [vmem:[#allocation10_spill] sm:$0xff] %v2929_v45  ;;  %v2946_v41 = vsel %vm1292_vm2, %v2929_v45, -inf }
 0x3f4   :  { %3184 = vst [vmem:[#allocation9_spill] sm:$0xff] %v2920_v42  ;;  %v2934_v10 = vsel %vm1292_vm2, %v2920_v42, -inf }
 0x3f5   :  { %1383 = vmax.xlane.f32.xlu1 %v2934_v10 }
 0x3f7   :  { %1385 = vmax.xlane.f32.xlu0 %v2940_v5 }
 0x3f9   :  { %1387 = vmax.xlane.f32.xlu1 %v2946_v41 }
 0x40f   :  { %v1330_v39 = vpop.xlane.xlu1 %1329 }
 0x410   :  { %vm1391_vm3 = vcmp.eq.f32.partialorder %v2673_v6, %v1330_v39  ;;  %v1326_v42 = vpop.xlane.xlu0 %1325 }
 0x411   :  { %v1424_v30 = vsel %vm1391_vm3, %v2950_v3, 128.0  ;;  %vm1389_vm4 = vcmp.eq.f32.partialorder %v2682_v15, %v1326_v42 }
 0x412   :  { %1458 = vmin.xlane.f32.xlu0 %v1424_v30  ;;  %v1422_v19 = vsel %vm1389_vm4, %v2950_v3, 128.0 }
 0x413   :  { %v1332_v51 = vpop.xlane.xlu1 %1331 }
 0x414   :  { %vm1392_vm5 = vcmp.eq.f32.partialorder %v2688_v13, %v1332_v51  ;;  %v1328_v33 = vpop.xlane.xlu0 %1327 }
 0x415   :  { %v1425_v45 = vsel %vm1392_vm5, %v2950_v3, 128.0  ;;  %vm1390_vm6 = vcmp.eq.f32.partialorder %v2694_v16, %v1328_v33 }
 0x416   :  { %1460 = vmin.xlane.f32.xlu1 %v1425_v45  ;;  %1454 = vmin.xlane.f32.xlu0 %v1422_v19  ;;  %v1423_v6 = vsel %vm1390_vm6, %v2950_v3, 128.0 }
 0x41a   :  { %1456 = vmin.xlane.f32.xlu1 %v1423_v6 }
 0x41f   :  { %v1338_v39 = vpop.xlane.xlu0 %1337 }
 0x420   :  { %vm1395_vm7 = vcmp.eq.f32.partialorder %v2709_v22, %v1338_v39 }
 0x421   :  { %v1340_v15 = vpop.xlane.xlu1 %1339  ;;  %v1428_v42 = vsel %vm1395_vm7, %v2950_v3, 128.0 }
 0x422   :  { %vm1396_vm8 = vcmp.eq.f32.partialorder %v2718_v24, %v1340_v15  ;;  %1466 = vmin.xlane.f32.xlu0 %v1428_v42 }
 0x423   :  { %v1334_v13 = vpop.xlane.xlu0 %1333  ;;  %v1429_v30 = vsel %vm1396_vm8, %v2950_v3, 128.0 }
 0x424   :  { %vm1393_vm9 = vcmp.eq.f32.partialorder %v2724_v25, %v1334_v13  ;;  %1468 = vmin.xlane.f32.xlu1 %v1429_v30 }
 0x425   :  { %v1336_v16 = vpop.xlane.xlu1 %1335  ;;  %v1426_v19 = vsel %vm1393_vm9, %v2950_v3, 128.0 }
 0x426   :  { %vm1394_vm10 = vcmp.eq.f32.partialorder %v2730_v26, %v1336_v16  ;;  %1462 = vmin.xlane.f32.xlu0 %v1426_v19 }
 0x427   :  { %v1427_v22 = vsel %vm1394_vm10, %v2950_v3, 128.0 }
 0x428   :  { %1464 = vmin.xlane.f32.xlu1 %v1427_v22 }
 0x42f   :  { %v1346_v33 = vpop.xlane.xlu0 %1345 }
 0x430   :  { %vm1399_vm11 = vcmp.eq.f32.partialorder %v2745_v34, %v1346_v33 }
 0x431   :  { %v1348_v24 = vpop.xlane.xlu1 %1347  ;;  %v1432_v45 = vsel %vm1399_vm11, %v2950_v3, 128.0 }
 0x432   :  { %vm1400_vm12 = vcmp.eq.f32.partialorder %v2754_v36, %v1348_v24  ;;  %1474 = vmin.xlane.f32.xlu0 %v1432_v45 }
 0x433   :  { %v1342_v25 = vpop.xlane.xlu0 %1341  ;;  %v1433_v51 = vsel %vm1400_vm12, %v2950_v3, 128.0 }
 0x434   :  { %vm1397_vm13 = vcmp.eq.f32.partialorder %v2760_v37, %v1342_v25  ;;  %1476 = vmin.xlane.f32.xlu1 %v1433_v51 }
 0x435   :  { %v1344_v26 = vpop.xlane.xlu1 %1343  ;;  %v1430_v6 = vsel %vm1397_vm13, %v2950_v3, 128.0 }
 0x436   :  { %vm1398_vm14 = vcmp.eq.f32.partialorder %v2766_v38, %v1344_v26  ;;  %1470 = vmin.xlane.f32.xlu0 %v1430_v6 }
 0x437   :  { %v1431_v34 = vsel %vm1398_vm14, %v2950_v3, 128.0 }
 0x438   :  { %1472 = vmin.xlane.f32.xlu1 %v1431_v34 }
 0x43f   :  { %v1354_v39 = vpop.xlane.xlu0 %1353 }
 0x440   :  { %vm1403_vm15 = vcmp.eq.f32.partialorder %v2781_v46, %v1354_v39 }
 0x441   :  { %v1356_v36 = vpop.xlane.xlu1 %1355  ;;  %v1436_v15 = vsel %vm1403_vm15, %v2950_v3, 128.0 }
 0x442   :  { %vm1404_vm0 = vcmp.eq.f32.partialorder %v2790_v48, %v1356_v36  ;;  %1482 = vmin.xlane.f32.xlu0 %v1436_v15 }
 0x443   :  { %v1350_v37 = vpop.xlane.xlu0 %1349  ;;  %v1437_v42 = vsel %vm1404_vm0, %v2950_v3, 128.0 }
 0x444   :  { %vm1401_vm1 = vcmp.eq.f32.partialorder %v2796_v49, %v1350_v37  ;;  %1484 = vmin.xlane.f32.xlu1 %v1437_v42 }
 0x445   :  { %v1352_v38 = vpop.xlane.xlu1 %1351  ;;  %v1434_v13 = vsel %vm1401_vm1, %v2950_v3, 128.0 }
 0x446   :  { %vm1402_vm2 = vcmp.eq.f32.partialorder %v2802_v50, %v1352_v38  ;;  %1478 = vmin.xlane.f32.xlu0 %v1434_v13 }
 0x447   :  { %v1435_v46 = vsel %vm1402_vm2, %v2950_v3, 128.0 }
 0x448   :  { %1480 = vmin.xlane.f32.xlu1 %v1435_v46 }
 0x44f   :  { %v1362_v30 = vpop.xlane.xlu0 %1361 }
 0x450   :  { %vm1407_vm3 = vcmp.eq.f32.partialorder %v2817_v58, %v1362_v30 }
 0x451   :  { %v1364_v48 = vpop.xlane.xlu1 %1363  ;;  %v1440_v16 = vsel %vm1407_vm3, %v2950_v3, 128.0  ;;  %vm1518_vm3 = vcmp.eq.s32.totalorder %v2655_v2, 64 }
 0x452   :  { %vm1408_vm4 = vcmp.eq.f32.partialorder %v2826_v60, %v1364_v48  ;;  %1490 = vmin.xlane.f32.xlu0 %v1440_v16 }
 0x453   :  { %v1358_v49 = vpop.xlane.xlu0 %1357  ;;  %v1441_v19 = vsel %vm1408_vm4, %v2950_v3, 128.0 }
 0x454   :  { %vm1405_vm5 = vcmp.eq.f32.partialorder %v2832_v61, %v1358_v49  ;;  %1492 = vmin.xlane.f32.xlu1 %v1441_v19 }
 0x455   :  { %v1360_v50 = vpop.xlane.xlu1 %1359  ;;  %v1438_v22 = vsel %vm1405_vm5, %v2950_v3, 128.0 }
 0x456   :  { %vm1406_vm6 = vcmp.eq.f32.partialorder %v2838_v62, %v1360_v50  ;;  %1486 = vmin.xlane.f32.xlu0 %v1438_v22 }
 0x457   :  { %v1439_v58 = vsel %vm1406_vm6, %v2950_v3, 128.0 }
 0x458   :  { %1488 = vmin.xlane.f32.xlu1 %v1439_v58 }
 0x45f   :  { %v1370_v33 = vpop.xlane.xlu0 %1369 }
 0x460   :  { %vm1411_vm7 = vcmp.eq.f32.partialorder %v2853_v18, %v1370_v33 }
 0x461   :  { %v1372_v60 = vpop.xlane.xlu1 %1371  ;;  %v1444_v24 = vsel %vm1411_vm7, %v2950_v3, 128.0 }
 0x462   :  { %vm1412_vm8 = vcmp.eq.f32.partialorder %v2862_v21, %v1372_v60  ;;  %1498 = vmin.xlane.f32.xlu0 %v1444_v24 }
 0x463   :  { %v1366_v61 = vpop.xlane.xlu0 %1365  ;;  %v1445_v45 = vsel %vm1412_vm8, %v2950_v3, 128.0 }
 0x464   :  { %vm1409_vm9 = vcmp.eq.f32.partialorder %v2868_v27, %v1366_v61  ;;  %1500 = vmin.xlane.f32.xlu1 %v1445_v45 }
 0x465   :  { %v1368_v62 = vpop.xlane.xlu1 %1367  ;;  %v1442_v25 = vsel %vm1409_vm9, %v2950_v3, 128.0 }
 0x466   :  { %vm1410_vm10 = vcmp.eq.f32.partialorder %v2874_v29, %v1368_v62  ;;  %1494 = vmin.xlane.f32.xlu0 %v1442_v25 }
 0x467   :  { %v1443_v18 = vsel %vm1410_vm10, %v2950_v3, 128.0 }
 0x468   :  { %1496 = vmin.xlane.f32.xlu1 %v1443_v18 }
 0x46f   :  { %v1378_v51 = vpop.xlane.xlu0 %1377 }
 0x470   :  { %vm1415_vm11 = vcmp.eq.f32.partialorder %v2889_v53, %v1378_v51 }
 0x471   :  { %v1380_v21 = vpop.xlane.xlu1 %1379  ;;  %v1448_v26 = vsel %vm1415_vm11, %v2950_v3, 128.0 }
 0x472   :  { %vm1416_vm12 = vcmp.eq.f32.partialorder %v2898_v57, %v1380_v21  ;;  %1506 = vmin.xlane.f32.xlu0 %v1448_v26 }
 0x473   :  { %v1374_v27 = vpop.xlane.xlu0 %1373  ;;  %v1449_v6 = vsel %vm1416_vm12, %v2950_v3, 128.0 }
 0x474   :  { %vm1413_vm13 = vcmp.eq.f32.partialorder %v2904_v63, %v1374_v27  ;;  %1508 = vmin.xlane.f32.xlu1 %v1449_v6 }
 0x475   :  { %v1376_v29 = vpop.xlane.xlu1 %1375  ;;  %v1446_v34 = vsel %vm1413_vm13, %v2950_v3, 128.0 }
 0x476   :  { %vm1414_vm14 = vcmp.eq.f32.partialorder %v2910_v4, %v1376_v29  ;;  %1502 = vmin.xlane.f32.xlu0 %v1446_v34 }
 0x477   :  { %v1447_v53 = vsel %vm1414_vm14, %v2950_v3, 128.0 }
 0x478   :  { %1504 = vmin.xlane.f32.xlu1 %v1447_v53 }
 0x480   :  { %v1382_v39 = vpop.xlane.xlu0 %1381 }
 0x481   :  { %vm1417_vm15 = vcmp.eq.f32.partialorder %v2925_v54, %v1382_v39 }
 0x482   :  { %v1384_v57 = vpop.xlane.xlu1 %1383  ;;  %v1450_v36 = vsel %vm1417_vm15, %v2950_v3, 128.0 }
 0x483   :  { %vm1418_vm0 = vcmp.eq.f32.partialorder %v2934_v10, %v1384_v57  ;;  %1510 = vmin.xlane.f32.xlu0 %v1450_v36 }
 0x484   :  { %v1386_v63 = vpop.xlane.xlu0 %1385  ;;  %v1451_v15 = vsel %vm1418_vm0, %v2950_v3, 128.0 }
 0x485   :  { %vm1419_vm1 = vcmp.eq.f32.partialorder %v2940_v5, %v1386_v63  ;;  %1512 = vmin.xlane.f32.xlu1 %v1451_v15 }
 0x486   :  { %v1388_v4 = vpop.xlane.xlu1 %1387  ;;  %v1452_v37 = vsel %vm1419_vm1, %v2950_v3, 128.0 }
 0x487   :  { %vm1420_vm2 = vcmp.eq.f32.partialorder %v2946_v41, %v1388_v4  ;;  %1514 = vmin.xlane.f32.xlu0 %v1452_v37  ;;  %v3186_v37 = vld [vmem:[#allocation2_spill] sm:$0xff] }
 0x488   :  { %v1453_v54 = vsel %vm1420_vm2, %v2950_v3, 128.0 }
 0x489   :  { %1516 = vmin.xlane.f32.xlu1 %v1453_v54 }
 0x49f   :  { %v1459_v42 = vpop.xlane.xlu0 %1458 }
 0x4a0   :  { %v1521_v38 = vsel %vm1518_vm3, %v1459_v42, %v2662_v14 }
 0x4a3   :  { %v1461_v10 = vpop.xlane.xlu1 %1460  ;;  %v1455_v46 = vpop.xlane.xlu0 %1454 }
 0x4a4   :  { %v1522_v5 = vsel %vm1518_vm3, %v1461_v10, %v2668_v11  ;;  %v1519_v3 = vsel %vm1518_vm3, %v1455_v46, %v2665_v8  ;;  %v3187_v10 = vld [vmem:[#allocation3_spill] sm:$0xff] }
 0x4a5   :  { %v1838_v13 = vpack.c.bf16 %v1522_v5, %v1521_v38  ;;  %v3188_v5 = vld [vmem:[#allocation5_spill] sm:$0xff] }
 0x4a7   :  { %1910 = vst [vmem:[%s3167_s6 + $0x8] sm:$0xff] %v1838_v13   ;;  %v1457_v41 = vpop.xlane.xlu1 %1456 }
 0x4a8   :  { %v1520_v30 = vsel %vm1518_vm3, %v1457_v41, %v2676_v12 }
 0x4a9   :  { %v1833_v14 = vpack.c.bf16 %v1520_v30, %v1519_v3  ;;  %v3189_v3 = vld [vmem:[#allocation4_spill] sm:$0xff] }
 0x4ab   :  { %1834 = vst [vmem:[%s3167_s6] sm:$0xff] %v1833_v14   ;;  %v3190_v14 = vld [vmem:[#allocation6_spill] sm:$0xff] }
 0x4af   :  { %v1467_v11 = vpop.xlane.xlu0 %1466 }
 0x4b0   :  { %v1525_v16 = vsel %vm1518_vm3, %v1467_v11, %v2698_v17 }
 0x4b1   :  { %v1469_v48 = vpop.xlane.xlu1 %1468 }
 0x4b2   :  { %v1526_v49 = vsel %vm1518_vm3, %v1469_v48, %v2704_v20 }
 0x4b3   :  { %v1848_v8 = vpack.c.bf16 %v1526_v49, %v1525_v16  ;;  %v1463_v19 = vpop.xlane.xlu0 %1462 }
 0x4b4   :  { %v1523_v50 = vsel %vm1518_vm3, %v1463_v19, %v2701_v1 }
 0x4b5   :  { %1912 = vst [vmem:[%s3167_s6 + $0x18] sm:$0xff] %v1848_v8   ;;  %v1465_v12 = vpop.xlane.xlu1 %1464  ;;  %v3191_v8 = vld [vmem:[#allocation7_spill] sm:$0xff] }
 0x4b6   :  { %v1524_v22 = vsel %vm1518_vm3, %v1465_v12, %v2713_v23  ;;  %v3192_v12 = vld [vmem:[#allocation9_spill] sm:$0xff] }
 0x4b7   :  { %v1843_v17 = vpack.c.bf16 %v1524_v22, %v1523_v50 }
 0x4b9   :  { %1911 = vst [vmem:[%s3167_s6 + $0x10] sm:$0xff] %v1843_v17  }
 0x4bf   :  { %v1475_v20 = vpop.xlane.xlu0 %1474 }
 0x4c0   :  { %v1529_v33 = vsel %vm1518_vm3, %v1475_v20, %v2734_v28 }
 0x4c1   :  { %v1477_v58 = vpop.xlane.xlu1 %1476 }
 0x4c2   :  { %v1530_v60 = vsel %vm1518_vm3, %v1477_v58, %v2740_v32  ;;  %v3193_v58 = vld [vmem:[#allocation8_spill] sm:$0xff] }
 0x4c3   :  { %v1858_v1 = vpack.c.bf16 %v1530_v60, %v1529_v33  ;;  %v1471_v24 = vpop.xlane.xlu0 %1470  ;;  %v3194_v60 = vld [vmem:[#allocation10_spill] sm:$0xff] }
 0x4c4   :  { %v1527_v61 = vsel %vm1518_vm3, %v1471_v24, %v2737_v31 }
 0x4c5   :  { %1914 = vst [vmem:[%s3167_s6 + $0x28] sm:$0xff] %v1858_v1   ;;  %v1473_v23 = vpop.xlane.xlu1 %1472 }
 0x4c6   :  { %v1528_v45 = vsel %vm1518_vm3, %v1473_v23, %v2749_v35 }
 0x4c7   :  { %v1853_v28 = vpack.c.bf16 %v1528_v45, %v1527_v61 }
 0x4c9   :  { %1913 = vst [vmem:[%s3167_s6 + $0x20] sm:$0xff] %v1853_v28  }
 0x4cf   :  { %v1483_v32 = vpop.xlane.xlu0 %1482 }
 0x4d0   :  { %v1533_v25 = vsel %vm1518_vm3, %v1483_v32, %v2770_v40 }
 0x4d1   :  { %v1485_v62 = vpop.xlane.xlu1 %1484 }
 0x4d2   :  { %v1534_v18 = vsel %vm1518_vm3, %v1485_v62, %v2776_v44 }
 0x4d3   :  { %v1868_v31 = vpack.c.bf16 %v1534_v18, %v1533_v25  ;;  %v1479_v51 = vpop.xlane.xlu0 %1478 }
 0x4d4   :  { %v1531_v21 = vsel %vm1518_vm3, %v1479_v51, %v2773_v43 }
 0x4d5   :  { %1916 = vst [vmem:[%s3167_s6 + $0x38] sm:$0xff] %v1868_v31   ;;  %v1481_v35 = vpop.xlane.xlu1 %1480 }
 0x4d6   :  { %v1532_v26 = vsel %vm1518_vm3, %v1481_v35, %v2785_v47 }
 0x4d7   :  { %v1863_v40 = vpack.c.bf16 %v1532_v26, %v1531_v21 }
 0x4d9   :  { %1915 = vst [vmem:[%s3167_s6 + $0x30] sm:$0xff] %v1863_v40  }
 0x4df   :  { %v1491_v44 = vpop.xlane.xlu0 %1490 }
 0x4e0   :  { %v1537_v6 = vsel %vm1518_vm3, %v1491_v44, %v2806_v52 }
 0x4e1   :  { %v1493_v27 = vpop.xlane.xlu1 %1492 }
 0x4e2   :  { %v1538_v29 = vsel %vm1518_vm3, %v1493_v27, %v2812_v56 }
 0x4e3   :  { %v1878_v43 = vpack.c.bf16 %v1538_v29, %v1537_v6  ;;  %v1487_v34 = vpop.xlane.xlu0 %1486 }
 0x4e4   :  { %v1535_v53 = vsel %vm1518_vm3, %v1487_v34, %v2809_v55 }
 0x4e5   :  { %1918 = vst [vmem:[%s3167_s6 + $0x48] sm:$0xff] %v1878_v43   ;;  %v1489_v47 = vpop.xlane.xlu1 %1488 }
 0x4e6   :  { %v1536_v39 = vsel %vm1518_vm3, %v1489_v47, %v2821_v59 }
 0x4e7   :  { %v1873_v52 = vpack.c.bf16 %v1536_v39, %v1535_v53 }
 0x4e9   :  { %1917 = vst [vmem:[%s3167_s6 + $0x40] sm:$0xff] %v1873_v52  }
 0x4ef   :  { %v1499_v56 = vpop.xlane.xlu0 %1498 }
 0x4f0   :  { %v1541_v36 = vsel %vm1518_vm3, %v1499_v56, %v2842_v0 }
 0x4f1   :  { %v1501_v57 = vpop.xlane.xlu1 %1500 }
 0x4f2   :  { %v1542_v63 = vsel %vm1518_vm3, %v1501_v57, %v2848_v7 }
 0x4f3   :  { %v1888_v55 = vpack.c.bf16 %v1542_v63, %v1541_v36  ;;  %v1495_v15 = vpop.xlane.xlu0 %1494 }
 0x4f4   :  { %v1539_v4 = vsel %vm1518_vm3, %v1495_v15, %v2845_v9 }
 0x4f5   :  { %1920 = vst [vmem:[%s3167_s6 + $0x58] sm:$0xff] %v1888_v55   ;;  %v1497_v59 = vpop.xlane.xlu1 %1496 }
 0x4f6   :  { %v1540_v54 = vsel %vm1518_vm3, %v1497_v59, %v3186_v37 }
 0x4f7   :  { %v1883_v0 = vpack.c.bf16 %v1540_v54, %v1539_v4 }
 0x4f9   :  { %1919 = vst [vmem:[%s3167_s6 + $0x50] sm:$0xff] %v1883_v0  }
 0x4ff   :  { %v1507_v7 = vpop.xlane.xlu0 %1506 }
 0x500   :  { %v1545_v38 = vsel %vm1518_vm3, %v1507_v7, %v3187_v10 }
 0x501   :  { %v1509_v42 = vpop.xlane.xlu1 %1508 }
 0x502   :  { %v1546_v13 = vsel %vm1518_vm3, %v1509_v42, %v3188_v5 }
 0x503   :  { %v1898_v9 = vpack.c.bf16 %v1546_v13, %v1545_v38  ;;  %v1503_v46 = vpop.xlane.xlu0 %1502 }
 0x504   :  { %v1543_v30 = vsel %vm1518_vm3, %v1503_v46, %v3189_v3 }
 0x505   :  { %1922 = vst [vmem:[%s3167_s6 + $0x68] sm:$0xff] %v1898_v9   ;;  %v1505_v41 = vpop.xlane.xlu1 %1504 }
 0x506   :  { %v1544_v11 = vsel %vm1518_vm3, %v1505_v41, %v3190_v14 }
 0x507   :  { %v1893_v48 = vpack.c.bf16 %v1544_v11, %v1543_v30 }
 0x509   :  { %1921 = vst [vmem:[%s3167_s6 + $0x60] sm:$0xff] %v1893_v48  }
 0x510   :  { %v1511_v16 = vpop.xlane.xlu0 %1510 }
 0x511   :  { %v1547_v19 = vsel %vm1518_vm3, %v1511_v16, %v3191_v8 }
 0x512   :  { %v1513_v49 = vpop.xlane.xlu1 %1512 }
 0x513   :  { %v1548_v50 = vsel %vm1518_vm3, %v1513_v49, %v3192_v12 }
 0x514   :  { %v1903_v22 = vpack.c.bf16 %v1548_v50, %v1547_v19  ;;  %v1515_v17 = vpop.xlane.xlu0 %1514 }
 0x515   :  { %v1549_v33 = vsel %vm1518_vm3, %v1515_v17, %v3193_v58 }
 0x516   :  { %1923 = vst [vmem:[%s3167_s6 + $0x70] sm:$0xff] %v1903_v22   ;;  %v1517_v20 = vpop.xlane.xlu1 %1516 }
 0x517   :  { %v1550_v1 = vsel %vm1518_vm3, %v1517_v20, %v3194_v60 }
 0x518   :  { %v1908_v24 = vpack.c.bf16 %v1550_v1, %v1549_v33 }
 0x51a   :  { %1924 = vst [vmem:[%s3167_s6 + $0x78] sm:$0xff] %v1908_v24  }

</bundles_post_ra>
